<compile_context>
chip_gen: v7x
topology: tpu7x:2x2x1
jax: 0.10.0
libtpu: 0.0.40
codegen_flags: <defaults>
</compile_context>

<pallas_src>
import jax
import jax.numpy as jnp
from jax.experimental import pallas as pl
from jax.experimental.pallas import tpu as pltpu


# Lane-aligned (padded) feature dims for the projection head.
FEAT = 1024   # backbone features: 1000 -> 1024
HID1 = 512    # fc1 out:            400 -> 512
HID2 = 256    # fc2 out:            200 -> 256


def simclr_kernel(x_ref, wbb_ref, bbb_ref, w1_ref, b1_ref, w2_ref, b2_ref,
                  out_ref, gap_ref):
    """Fused SIMCLR forward for one batch tile.

    x_ref   : (Bt, C, HWt)  current input tile (f32)
    wbb_ref : (C, FEAT)     backbone stand-in weight, pre-scaled by 1/(H*W)
    bbb_ref : (1, FEAT)
    w1_ref  : (FEAT, HID1)  fc1 weight (stored as (in, out))
    b1_ref  : (1, HID1)
    w2_ref  : (HID1, HID2)  fc2 weight (stored as (in, out))
    b2_ref  : (1, HID2)
    out_ref : (Bt, HID2)
    gap_ref : (Bt, C) f32 scratch — spatial-sum accumulator
    """
    k = pl.program_id(1)

    @pl.when(k == 0)
    def _init():
        gap_ref[...] = jnp.zeros_like(gap_ref)

    # Streaming spatial reduction (the 1/(H*W) scale is folded into wbb).
    gap_ref[...] += jnp.sum(x_ref[...], axis=-1)

    @pl.when(k == pl.num_programs(1) - 1)
    def _finalize():
        # Backbone stand-in: GAP -> linear to 1024 (padded 1000).
        feat = jnp.dot(gap_ref[...], wbb_ref[...],
                       preferred_element_type=jnp.float32) + bbb_ref[...]
        # Projection head: fc1 -> ReLU -> fc2 -> ReLU.
        h1 = jnp.maximum(
            jnp.dot(feat, w1_ref[...],
                    preferred_element_type=jnp.float32) + b1_ref[...], 0.0)
        h2 = jnp.maximum(
            jnp.dot(h1, w2_ref[...],
                    preferred_element_type=jnp.float32) + b2_ref[...], 0.0)
        out_ref[...] = h2.astype(out_ref.dtype)


def _pad_to(a, shape):
    """Zero-pad array `a` up to `shape` (per-dim, trailing padding)."""
    out = jnp.zeros(shape, a.dtype)
    return out.at[tuple(slice(0, s) for s in a.shape)].set(a)


def simclr_forward(x_nchw, params, *, batch_tile=128, hw_tile=2048):
    """x_nchw: (B, C, H, W) float32 (PyTorch-style NCHW input)."""
    wbb, bbb, w1, b1, w2, b2 = params
    B, C, H, W = x_nchw.shape
    HW = H * W
    out_dim = w2.shape[1]          # 200 (true, unpadded output width)

    # ---- tile sizes: lane-aligned, capped to the actual problem size ----
    hwt = min(hw_tile, pl.cdiv(HW, 128) * 128)       # multiple of 128
    bt = min(batch_tile, pl.cdiv(B, 8) * 8)          # multiple of 8
    hw_pad = pl.cdiv(HW, hwt) * hwt
    b_pad = pl.cdiv(B, bt) * bt

    # ---- pad input with zeros (zeros do not perturb the spatial sum) ----
    x_flat = x_nchw.reshape(B, C, HW).astype(jnp.float32)
    x_p = _pad_to(x_flat, (b_pad, C, hw_pad))

    # ---- pad / pre-scale parameters to lane-aligned shapes ----
    wbb_p = _pad_to(wbb.astype(jnp.float32) / jnp.float32(HW), (C, FEAT))
    bbb_p = _pad_to(bbb.reshape(1, -1).astype(jnp.float32), (1, FEAT))
    w1_p = _pad_to(w1.astype(jnp.float32), (FEAT, HID1))
    b1_p = _pad_to(b1.reshape(1, -1).astype(jnp.float32), (1, HID1))
    w2_p = _pad_to(w2.astype(jnp.float32), (HID1, HID2))
    b2_p = _pad_to(b2.reshape(1, -1).astype(jnp.float32), (1, HID2))

    grid = (b_pad // bt, hw_pad // hwt)

    # Weights/biases use constant block indices -> stay resident in VMEM.
    const = lambda i, k: (0, 0)
    in_specs = [
        pl.BlockSpec((bt, C, hwt), lambda i, k: (i, 0, k)),   # x (streamed)
        pl.BlockSpec((C, FEAT), const),                       # wbb
        pl.BlockSpec((1, FEAT), const),                       # bbb
        pl.BlockSpec((FEAT, HID1), const),                    # w1
        pl.BlockSpec((1, HID1), const),                       # b1
        pl.BlockSpec((HID1, HID2), const),                    # w2
        pl.BlockSpec((1, HID2), const),                       # b2
    ]
    out_spec = pl.BlockSpec((bt, HID2), lambda i, k: (i, 0))

    flops = (2 * b_pad * (C * FEAT + FEAT * HID1 + HID1 * HID2)
             + b_pad * C * hw_pad)
    bytes_accessed = 4 * (x_p.size + wbb_p.size + bbb_p.size + w1_p.size
                          + b1_p.size + w2_p.size + b2_p.size + b_pad * HID2)

    out_pad = pl.pallas_call(
        simclr_kernel,
        out_shape=jax.ShapeDtypeStruct((b_pad, HID2), jnp.float32),
        grid_spec=pltpu.PrefetchScalarGridSpec(
            num_scalar_prefetch=0,
            grid=grid,
            in_specs=in_specs,
            out_specs=out_spec,
            scratch_shapes=[pltpu.VMEM((bt, C), jnp.float32)],
        ),
        compiler_params=pltpu.CompilerParams(
            dimension_semantics=("parallel", "arbitrary"),
            vmem_limit_bytes=48 * 1024 * 1024,
        ),
        cost_estimate=pl.CostEstimate(
            flops=flops, transcendentals=0, bytes_accessed=bytes_accessed),
    )(x_p, wbb_p, bbb_p, w1_p, b1_p, w2_p, b2_p)

    # Slice off batch padding and feature padding.
    return out_pad[:B, :out_dim]


def init_params(key, in_channels):
    """Deterministic synthetic parameters (not a checkpoint load)."""
    k = jax.random.split(key, 6)
    # Backbone stand-in: GAP(C) -> 1000.
    wbb = jax.random.normal(k[0], (in_channels, 1000), jnp.float32) * 0.02
    bbb = jax.random.normal(k[1], (1000,), jnp.float32) * 0.02
    # fc1: Linear(1000, 400), stored as (in, out).
    w1 = jax.random.normal(k[2], (1000, 400), jnp.float32) * 0.02
    b1 = jax.random.normal(k[3], (400,), jnp.float32) * 0.02
    # fc2: Linear(400, 200), stored as (in, out).
    w2 = jax.random.normal(k[4], (400, 200), jnp.float32) * 0.02
    b2 = jax.random.normal(k[5], (200,), jnp.float32) * 0.02
    return (wbb, bbb, w1, b1, w2, b2)


if __name__ == "__main__":
    key = jax.random.PRNGKey(0)
    kx, kp = jax.random.split(key)

    B, C, H, W = 2, 4, 16, 16
    x = jax.random.normal(kx, (B, C, H, W), jnp.float32)
    params = init_params(kp, C)

    out = simclr_forward(x, params)
    out = jax.block_until_ready(out)

    # Reference computation in plain JAX.
    wbb, bbb, w1, b1, w2, b2 = params
    gap = jnp.mean(x.reshape(B, C, H * W), axis=-1)
    feat = gap @ wbb + bbb
    ref = jnp.maximum(jnp.maximum(feat @ w1 + b1, 0.0) @ w2 + b2, 0.0)

    assert out.shape == (B, 200)
    assert jnp.allclose(out, ref, atol=1e-4, rtol=1e-4)

    print("KERNEL_OK")
</pallas_src>

<mosaic_0001>
module attributes {stable_mosaic.version = 11 : i64} {
  func.func @simclr_kernel(%arg0: i32, %arg1: i32, %arg2: memref<8x4x256xf32, #tpu.memory_space<vmem>>, %arg3: memref<4x1024xf32, #tpu.memory_space<vmem>>, %arg4: memref<1x1024xf32, #tpu.memory_space<vmem>>, %arg5: memref<1024x512xf32, #tpu.memory_space<vmem>>, %arg6: memref<1x512xf32, #tpu.memory_space<vmem>>, %arg7: memref<512x256xf32, #tpu.memory_space<vmem>>, %arg8: memref<1x256xf32, #tpu.memory_space<vmem>>, %arg9: memref<8x256xf32, #tpu.memory_space<vmem>>, %arg10: memref<8x4xf32, #tpu.memory_space<vmem>>) attributes {dimension_semantics = [#tpu.dimension_semantics<parallel>, #tpu.dimension_semantics<arbitrary>], iteration_bounds = array<i64: 1, 1>, scalar_prefetch = 0 : i64, scratch_operands = 1 : i64, tpu.core_type = #tpu.core_type<tc>, window_params = [{transform_indices = @transform_0, window_bounds = array<i64: 8, 4, 256>}, {pipeline_mode = #tpu.pipeline_mode<synchronous>, transform_indices = @transform_1, window_bounds = array<i64: 4, 1024>}, {pipeline_mode = #tpu.pipeline_mode<synchronous>, transform_indices = @transform_2, window_bounds = array<i64: 1, 1024>}, {pipeline_mode = #tpu.pipeline_mode<synchronous>, transform_indices = @transform_3, window_bounds = array<i64: 1024, 512>}, {pipeline_mode = #tpu.pipeline_mode<synchronous>, transform_indices = @transform_4, window_bounds = array<i64: 1, 512>}, {pipeline_mode = #tpu.pipeline_mode<synchronous>, transform_indices = @transform_5, window_bounds = array<i64: 512, 256>}, {pipeline_mode = #tpu.pipeline_mode<synchronous>, transform_indices = @transform_6, window_bounds = array<i64: 1, 256>}, {transform_indices = @transform_7, window_bounds = array<i64: 8, 256>}]} {
    %c0_i32 = arith.constant 0 : i32
    %0 = arith.cmpi eq, %arg1, %c0_i32 : i32
    %1 = arith.extui %0 : i1 to i32
    %c0_i32_0 = arith.constant 0 : i32
    %2 = arith.cmpi ne, %1, %c0_i32_0 : i32
    scf.if %2 {
      %cst_9 = arith.constant 0.000000e+00 : f32
      %11 = vector.broadcast %cst_9 : f32 to vector<8x4xf32>
      %c0_10 = arith.constant 0 : index
      %c0_11 = arith.constant 0 : index
      %12 = vector.load %arg10[%c0_10, %c0_11] : memref<8x4xf32, #tpu.memory_space<vmem>>, vector<8x4xf32>
      tpu.vector_store %arg10[%c0_10, %c0_11], %11 {strides = array<i32>} : memref<8x4xf32, #tpu.memory_space<vmem>>, vector<8x4xf32>,
    } else {
    }
    %c0 = arith.constant 0 : index
    %c0_1 = arith.constant 0 : index
    %3 = vector.load %arg10[%c0, %c0_1] : memref<8x4xf32, #tpu.memory_space<vmem>>, vector<8x4xf32>
    %c0_2 = arith.constant 0 : index
    %c0_3 = arith.constant 0 : index
    %c0_4 = arith.constant 0 : index
    %4 = vector.load %arg2[%c0_2, %c0_3, %c0_4] : memref<8x4x256xf32, #tpu.memory_space<vmem>>, vector<8x4x256xf32>
    %cst = arith.constant dense<0.000000e+00> : vector<8x4xf32>
    %5 = vector.multi_reduction <add>, %4, %cst [2] : vector<8x4x256xf32> to vector<8x4xf32>
    %6 = arith.addf %3, %5 : vector<8x4xf32>
    %c0_5 = arith.constant 0 : index
    %c0_6 = arith.constant 0 : index
    %7 = vector.load %arg10[%c0_5, %c0_6] : memref<8x4xf32, #tpu.memory_space<vmem>>, vector<8x4xf32>
    tpu.vector_store %arg10[%c0_5, %c0_6], %6 {strides = array<i32>} : memref<8x4xf32, #tpu.memory_space<vmem>>, vector<8x4xf32>,
    %c0_i32_7 = arith.constant 0 : i32
    %8 = arith.cmpi eq, %arg1, %c0_i32_7 : i32
    %9 = arith.extui %8 : i1 to i32
    %c0_i32_8 = arith.constant 0 : i32
    %10 = arith.cmpi ne, %9, %c0_i32_8 : i32
    scf.if %10 {
      %c0_9 = arith.constant 0 : index
      %c0_10 = arith.constant 0 : index
      %11 = vector.load %arg10[%c0_9, %c0_10] : memref<8x4xf32, #tpu.memory_space<vmem>>, vector<8x4xf32>
      %c0_11 = arith.constant 0 : index
      %c0_12 = arith.constant 0 : index
      %12 = vector.load %arg3[%c0_11, %c0_12] : memref<4x1024xf32, #tpu.memory_space<vmem>>, vector<4x1024xf32>
      %cst_13 = arith.constant dense<0.000000e+00> : vector<8x1024xf32>
      %13 = tpu.matmul %11, %12, %cst_13 {dimension_numbers = #tpu.dot_dimension_numbers<[1], [0], [0], [1], [0, 0, 1, 1], [], []>} : vector<8x4xf32>, vector<4x1024xf32>, vector<8x1024xf32> -> vector<8x1024xf32>
      %c0_14 = arith.constant 0 : index
      %c0_15 = arith.constant 0 : index
      %14 = vector.load %arg4[%c0_14, %c0_15] : memref<1x1024xf32, #tpu.memory_space<vmem>>, vector<1x1024xf32>
      %15 = vector.broadcast %14 : vector<1x1024xf32> to vector<8x1024xf32>
      %16 = arith.addf %13, %15 : vector<8x1024xf32>
      %c0_16 = arith.constant 0 : index
      %c0_17 = arith.constant 0 : index
      %17 = vector.load %arg5[%c0_16, %c0_17] : memref<1024x512xf32, #tpu.memory_space<vmem>>, vector<1024x512xf32>
      %cst_18 = arith.constant dense<0.000000e+00> : vector<8x512xf32>
      %18 = tpu.matmul %16, %17, %cst_18 {dimension_numbers = #tpu.dot_dimension_numbers<[1], [0], [0], [1], [0, 0, 1, 1], [], []>} : vector<8x1024xf32>, vector<1024x512xf32>, vector<8x512xf32> -> vector<8x512xf32>
      %c0_19 = arith.constant 0 : index
      %c0_20 = arith.constant 0 : index
      %19 = vector.load %arg6[%c0_19, %c0_20] : memref<1x512xf32, #tpu.memory_space<vmem>>, vector<1x512xf32>
      %20 = vector.broadcast %19 : vector<1x512xf32> to vector<8x512xf32>
      %21 = arith.addf %18, %20 : vector<8x512xf32>
      %cst_21 = arith.constant 0.000000e+00 : f32
      %22 = vector.broadcast %cst_21 : f32 to vector<8x512xf32>
      %23 = arith.maximumf %21, %22 : vector<8x512xf32>
      %c0_22 = arith.constant 0 : index
      %c0_23 = arith.constant 0 : index
      %24 = vector.load %arg7[%c0_22, %c0_23] : memref<512x256xf32, #tpu.memory_space<vmem>>, vector<512x256xf32>
      %cst_24 = arith.constant dense<0.000000e+00> : vector<8x256xf32>
      %25 = tpu.matmul %23, %24, %cst_24 {dimension_numbers = #tpu.dot_dimension_numbers<[1], [0], [0], [1], [0, 0, 1, 1], [], []>} : vector<8x512xf32>, vector<512x256xf32>, vector<8x256xf32> -> vector<8x256xf32>
      %c0_25 = arith.constant 0 : index
      %c0_26 = arith.constant 0 : index
      %26 = vector.load %arg8[%c0_25, %c0_26] : memref<1x256xf32, #tpu.memory_space<vmem>>, vector<1x256xf32>
      %27 = vector.broadcast %26 : vector<1x256xf32> to vector<8x256xf32>
      %28 = arith.addf %25, %27 : vector<8x256xf32>
      %cst_27 = arith.constant 0.000000e+00 : f32
      %29 = vector.broadcast %cst_27 : f32 to vector<8x256xf32>
      %30 = arith.maximumf %28, %29 : vector<8x256xf32>
      %c0_28 = arith.constant 0 : index
      %c0_29 = arith.constant 0 : index
      %31 = vector.load %arg9[%c0_28, %c0_29] : memref<8x256xf32, #tpu.memory_space<vmem>>, vector<8x256xf32>
      tpu.vector_store %arg9[%c0_28, %c0_29], %30 {strides = array<i32>} : memref<8x256xf32, #tpu.memory_space<vmem>>, vector<8x256xf32>,
    } else {
    }
    return
  }
  func.func @transform_0(%arg0: i32, %arg1: i32) -> (i32, i32, i32) {
    %c0_i32 = arith.constant 0 : i32
    %c0_i32_0 = arith.constant 0 : i32
    return %arg0, %c0_i32, %arg1 : i32, i32, i32
  }
  func.func @transform_1(%arg0: i32, %arg1: i32) -> (i32, i32) {
    %c0_i32 = arith.constant 0 : i32
    %c0_i32_0 = arith.constant 0 : i32
    %c0_i32_1 = arith.constant 0 : i32
    return %c0_i32, %c0_i32_0 : i32, i32
  }
  func.func @transform_2(%arg0: i32, %arg1: i32) -> (i32, i32) {
    %c0_i32 = arith.constant 0 : i32
    %c0_i32_0 = arith.constant 0 : i32
    %c0_i32_1 = arith.constant 0 : i32
    return %c0_i32, %c0_i32_0 : i32, i32
  }
  func.func @transform_3(%arg0: i32, %arg1: i32) -> (i32, i32) {
    %c0_i32 = arith.constant 0 : i32
    %c0_i32_0 = arith.constant 0 : i32
    %c0_i32_1 = arith.constant 0 : i32
    return %c0_i32, %c0_i32_0 : i32, i32
  }
  func.func @transform_4(%arg0: i32, %arg1: i32) -> (i32, i32) {
    %c0_i32 = arith.constant 0 : i32
    %c0_i32_0 = arith.constant 0 : i32
    %c0_i32_1 = arith.constant 0 : i32
    return %c0_i32, %c0_i32_0 : i32, i32
  }
  func.func @transform_5(%arg0: i32, %arg1: i32) -> (i32, i32) {
    %c0_i32 = arith.constant 0 : i32
    %c0_i32_0 = arith.constant 0 : i32
    %c0_i32_1 = arith.constant 0 : i32
    return %c0_i32, %c0_i32_0 : i32, i32
  }
  func.func @transform_6(%arg0: i32, %arg1: i32) -> (i32, i32) {
    %c0_i32 = arith.constant 0 : i32
    %c0_i32_0 = arith.constant 0 : i32
    %c0_i32_1 = arith.constant 0 : i32
    return %c0_i32, %c0_i32_0 : i32, i32
  }
  func.func @transform_7(%arg0: i32, %arg1: i32) -> (i32, i32) {
    %c0_i32 = arith.constant 0 : i32
    %c0_i32_0 = arith.constant 0 : i32
    return %arg0, %c0_i32 : i32, i32
  }
}

</mosaic_0001>

<bundles_post_ra>
// kernel: tpu_custom_call.1
= control target key start
LH: loop header
LB: loop body
LE: loop exit
PB: predicated region body
PF: predicated region fallthrough
CT: control target
= control target key end

     0   :  { %12 = vsyncpa [#allocation4], 0  ;;  %s3196_s0 = inlined_call_operand.hbm [shape: f32[8,4,256], index: 0, kind: input, shape index: {}]   ;;  %s3197_s1 = inlined_call_operand.hbm [shape: f32[4,1024], index: 1, kind: input, shape index: {}]   ;;  %s3198_s2 = inlined_call_operand.hbm [shape: f32[1,1024], index: 2, kind: input, shape index: {}]   ;;  %s3199_s3 = inlined_call_operand.hbm [shape: f32[1024,512], index: 3, kind: input, shape index: {}]   ;;  %s3200_s4 = inlined_call_operand.hbm [shape: f32[1,512], index: 4, kind: input, shape index: {}]   ;;  %s3201_s5 = inlined_call_operand.hbm [shape: f32[512,256], index: 5, kind: input, shape index: {}]   ;;  %s3202_s6 = inlined_call_operand.hbm [shape: f32[1,256], index: 6, kind: input, shape index: {}]   ;;  %s3203_s7 = inlined_call_operand.hbm [shape: f32[8,256], index: 7, kind: output, shape index: {}]  }
   0x1   :  { %13 = vsyncpa [#allocation7], 0 }
   0x2   :  { %14 = vsyncpa [#allocation10], 0 }
   0x3   :  { %15 = vsyncpa [#allocation13], 0 }
   0x4   :  { %16 = vsyncpa [#allocation5], 0  ;;  %s2911_s24 = smov [#allocation6]   ;;  %s2912_s26 = smov [#allocation9]  }
   0x5   :  { %s35_s25 = sshll.u32 %s2911_s24, 4  ;;  %s54_s27 = sshll.u32 %s2912_s26, 4  ;;  %s36_s25 = int_to_ptr.vmem [resolvable:$true] %s35_s25  ;;  %s2966_s27 = int_to_ptr.vmem [resolvable:$true] %s54_s27 }
   0x6   :  { %s2725_s30 = scalar_lea.hbm %s3197_s1, 512 }
   0x7   :  { %p2726_p0 = scmp.ne.s32.totalorder %s3197_s1, %s2725_s30  ;;  %p2729_p1 = scmp.lt.u32.totalorder %s2725_s30, %s3197_s1 }
   0x9   :  { %p2731_p2 = pnand %p2729_p1, %p2726_p0 }
   0xb   :  { %2734 = shalt.err (!%p2731_p2)
}
   0xc   :  { %s2735_s12 = scalar_lea.vmem %s36_s25, 512  ;;  %p2740_p4 = scmp.lt.s32.totalorder %s36_s25, %s36_s25 }
   0xd   :  { %p2736_p3 = scmp.ne.s32.totalorder %s36_s25, %s2735_s12  ;;  %p2741_p5 = scmp.lt.s32.totalorder %s2735_s12, %s2735_s12 }
   0xf   :  { %p2742_p6 = por %p2741_p5, %p2740_p4 }
  0x11   :  { %p2743_p7 = pnand %p2742_p6, %p2736_p3 }
  0x13   :  { %2746 = shalt.err (!%p2743_p7)
}
  0x14   :  { %38 = dma.hbm_to_vmem [thread:$0]  %s3197_s1, 512, %s36_s25, [#allocation7]  }
  0x15   :  { %s2747_s17 = scalar_lea.hbm %s3199_s3, 65536 }
  0x16   :  { %p2748_p8 = scmp.ne.s32.totalorder %s3199_s3, %s2747_s17  ;;  %p2751_p9 = scmp.lt.u32.totalorder %s2747_s17, %s3199_s3 }
  0x18   :  { %p2753_p10 = pnand %p2751_p9, %p2748_p8 }
  0x1a   :  { %2756 = shalt.err (!%p2753_p10)
}
  0x1b   :  { %s2757_s22 = scalar_lea.vmem %s2966_s27, 65536  ;;  %p2762_p12 = scmp.lt.s32.totalorder %s2966_s27, %s2966_s27 }
  0x1c   :  { %p2758_p11 = scmp.ne.s32.totalorder %s2966_s27, %s2757_s22  ;;  %p2763_p13 = scmp.lt.s32.totalorder %s2757_s22, %s2757_s22 }
  0x1e   :  { %p2764_p0 = por %p2763_p13, %p2762_p12 }
  0x20   :  { %p2765_p1 = pnand %p2764_p0, %p2758_p11 }
  0x22   :  { %2768 = shalt.err (!%p2765_p1)
}
  0x23   :  { %s2913_s1 = smov 512   ;;  %s2914_s23 = smov 32  }
  0x24   :  { %60 = dma.hbm_to_vmem [thread:$0]  %s3199_s3, 65536, %s2966_s27, [#allocation10], %s2913_s1, %s2913_s1, %s2914_s23  }
  0x25   :  { %s2915_s26 = smov [#allocation12]   ;;  %s2769_s8 = scalar_lea.hbm %s3201_s5, 16384 }
  0x26   :  { %s76_s28 = sshll.u32 %s2915_s26, 4  ;;  %p2770_p2 = scmp.ne.s32.totalorder %s3201_s5, %s2769_s8  ;;  %s77_s28 = int_to_ptr.vmem [resolvable:$true] %s76_s28 }
  0x27   :  { %p2773_p3 = scmp.lt.u32.totalorder %s2769_s8, %s3201_s5 }
  0x29   :  { %p2775_p4 = pnand %p2773_p3, %p2770_p2 }
  0x2b   :  { %2778 = shalt.err (!%p2775_p4)
}
  0x2c   :  { %s2779_s13 = scalar_lea.vmem %s77_s28, 16384  ;;  %p2784_p6 = scmp.lt.s32.totalorder %s77_s28, %s77_s28 }
  0x2d   :  { %p2780_p5 = scmp.ne.s32.totalorder %s77_s28, %s2779_s13  ;;  %p2785_p7 = scmp.lt.s32.totalorder %s2779_s13, %s2779_s13 }
  0x2f   :  { %p2786_p8 = por %p2785_p7, %p2784_p6 }
  0x31   :  { %p2787_p9 = pnand %p2786_p8, %p2780_p5 }
  0x33   :  { %2790 = shalt.err (!%p2787_p9)
}
  0x34   :  { %s2916_s3 = smov 256   ;;  %s2917_s27 = smov 16  }
  0x35   :  { %82 = dma.hbm_to_vmem [thread:$0]  %s3201_s5, 16384, %s77_s28, [#allocation13], %s2916_s3, %s2916_s3, %s2917_s27  }
  0x36   :  { %s2918_s16 = smov [#allocation3]   ;;  %s2791_s20 = scalar_lea.hbm %s3196_s0, 1024 }
  0x37   :  { %s22_s17 = sshll.u32 %s2918_s16, 4  ;;  %p2792_p10 = scmp.ne.s32.totalorder %s3196_s0, %s2791_s20  ;;  %s23_s17 = int_to_ptr.vmem [resolvable:$true] %s22_s17 }
  0x38   :  { %p2795_p11 = scmp.lt.u32.totalorder %s2791_s20, %s3196_s0 }
  0x3a   :  { %p2797_p12 = pnand %p2795_p11, %p2792_p10 }
  0x3c   :  { %2800 = shalt.err (!%p2797_p12)
}
  0x3d   :  { %s2801_s24 = scalar_lea.vmem %s23_s17, 1024  ;;  %p2806_p0 = scmp.lt.s32.totalorder %s23_s17, %s23_s17 }
  0x3e   :  { %p2802_p13 = scmp.ne.s32.totalorder %s23_s17, %s2801_s24  ;;  %p2807_p1 = scmp.lt.s32.totalorder %s2801_s24, %s2801_s24 }
  0x40   :  { %p2808_p2 = por %p2807_p1, %p2806_p0 }
  0x42   :  { %p2809_p3 = pnand %p2808_p2, %p2802_p13 }
  0x44   :  { %2812 = shalt.err (!%p2809_p3)
}
  0x45   :  { %s2919_s5 = smov 128   ;;  %s2920_s25 = smov 8  }
  0x46   :  { %28 = dma.hbm_to_vmem [thread:$0]  %s3196_s0, 1024, %s23_s17, [#allocation4], %s2919_s5, %s2919_s5, %s2920_s25  }
  0x47   :  { %s2921_s29 = smov [#allocation8]   ;;  %s2922_s8 = smov [#allocation11]  }
  0x48   :  { %s45_s30 = sshll.u32 %s2921_s29, 4  ;;  %s67_s9 = sshll.u32 %s2922_s8, 4  ;;  %s46_s30 = int_to_ptr.vmem [resolvable:$true] %s45_s30  ;;  %s68_s9 = int_to_ptr.vmem [resolvable:$true] %s67_s9 }
  0x49   :  { %s2813_s12 = scalar_lea.hbm %s3198_s2, 128 }
  0x4a   :  { %p2814_p4 = scmp.ne.s32.totalorder %s3198_s2, %s2813_s12  ;;  %p2817_p5 = scmp.lt.u32.totalorder %s2813_s12, %s3198_s2 }
  0x4c   :  { %p2819_p6 = pnand %p2817_p5, %p2814_p4 }
  0x4e   :  { %2822 = shalt.err (!%p2819_p6)
}
  0x4f   :  { %s2823_s0 = scalar_lea.vmem %s46_s30, 128  ;;  %p2828_p8 = scmp.lt.s32.totalorder %s46_s30, %s46_s30 }
  0x50   :  { %p2824_p7 = scmp.ne.s32.totalorder %s46_s30, %s2823_s0  ;;  %p2829_p9 = scmp.lt.s32.totalorder %s2823_s0, %s2823_s0 }
  0x52   :  { %p2830_p10 = por %p2829_p9, %p2828_p8 }
  0x54   :  { %p2831_p11 = pnand %p2830_p10, %p2824_p7 }
  0x56   :  { %2834 = shalt.err (!%p2831_p11)
}
  0x57   :  { %48 = dma.hbm_to_vmem [thread:$0]  %s3198_s2, 128, %s46_s30, [#allocation7]  }
  0x58   :  { %s2835_s19 = scalar_lea.hbm %s3200_s4, 64 }
  0x59   :  { %p2836_p12 = scmp.ne.s32.totalorder %s3200_s4, %s2835_s19  ;;  %p2839_p13 = scmp.lt.u32.totalorder %s2835_s19, %s3200_s4 }
  0x5b   :  { %p2841_p0 = pnand %p2839_p13, %p2836_p12 }
  0x5d   :  { %2844 = shalt.err (!%p2841_p0)
}
  0x5e   :  { %s2845_s23 = scalar_lea.vmem %s68_s9, 64  ;;  %p2850_p2 = scmp.lt.s32.totalorder %s68_s9, %s68_s9 }
  0x5f   :  { %p2846_p1 = scmp.ne.s32.totalorder %s68_s9, %s2845_s23  ;;  %p2851_p3 = scmp.lt.s32.totalorder %s2845_s23, %s2845_s23 }
  0x61   :  { %p2852_p4 = por %p2851_p3, %p2850_p2 }
  0x63   :  { %p2853_p5 = pnand %p2852_p4, %p2846_p1 }
  0x65   :  { %2856 = shalt.err (!%p2853_p5)
}
  0x66   :  { %70 = dma.hbm_to_vmem [thread:$0]  %s3200_s4, 64, %s68_s9, [#allocation10]  }
  0x67   :  { %s2923_s5 = smov [#allocation14]   ;;  %s2857_s29 = scalar_lea.hbm %s3202_s6, 32 }
  0x68   :  { %s89_s25 = sshll.u32 %s2923_s5, 4  ;;  %p2858_p6 = scmp.ne.s32.totalorder %s3202_s6, %s2857_s29  ;;  %s90_s25 = int_to_ptr.vmem [resolvable:$true] %s89_s25 }
  0x69   :  { %p2861_p7 = scmp.lt.u32.totalorder %s2857_s29, %s3202_s6 }
  0x6b   :  { %p2863_p8 = pnand %p2861_p7, %p2858_p6 }
  0x6d   :  { %2866 = shalt.err (!%p2863_p8)
}
  0x6e   :  { %s2867_s12 = scalar_lea.vmem %s90_s25, 32  ;;  %p2872_p10 = scmp.lt.s32.totalorder %s90_s25, %s90_s25 }
  0x6f   :  { %p2868_p9 = scmp.ne.s32.totalorder %s90_s25, %s2867_s12  ;;  %p2873_p11 = scmp.lt.s32.totalorder %s2867_s12, %s2867_s12 }
  0x71   :  { %p2874_p12 = por %p2873_p11, %p2872_p10 }
  0x73   :  { %p2875_p13 = pnand %p2874_p12, %p2868_p9 }
  0x75   :  { %2878 = shalt.err (!%p2875_p13)
}
  0x76   :  { %92 = dma.hbm_to_vmem [thread:$0]  %s3202_s6, 32, %s90_s25, [#allocation13]  }
  0x77   :  { %2901 = dma.done.wait [#allocation4], 1024  }
  0x78   :  { %2902 = vsyncadd [#allocation4], 4294966272 }
  0x79   :  { %2903 = dma.done.wait [#allocation7], 640  }
  0x7a   :  { %2904 = vsyncadd [#allocation7], 4294966656 }
  0x7b   :  { %2905 = dma.done.wait [#allocation10], 65600  }
  0x7c   :  { %2906 = vsyncadd [#allocation10], 4294901696 }
  0x7d   :  { %2907 = dma.done.wait [#allocation13], 16416  }
  0x7e   :  { %2908 = vsyncadd [#allocation13], 4294950880  ;;  %vm153_vm0 = vcmask 1043456   ;;  %v121_v0 = vld [vmem:[#allocation3] sm:$0xff]  ;;  %v123_v1 = vld [vmem:[#allocation3 + $0x10] sm:$0xff]  ;;  %vm118_vm1 = vcmask 31744   ;;  %v202_v49 = vlaneseq }
  0x7f   :  { %v122_v2 = vld [vmem:[#allocation3 + $0x8] sm:$0xff]  ;;  %v137_v3 = vcombine.high %v121_v0, %v121_v0  ;;  %v154_v4 = vsel %vm153_vm0, %v121_v0, 0.0  ;;  %v139_v5 = vcombine.high %v123_v1, %v123_v1  ;;  %v164_v6 = vsel %vm153_vm0, %v123_v1, 0.0  ;;  %v124_v7 = vld [vmem:[#allocation3 + $0x18] sm:$0xff]  ;;  %v125_v8 = vld [vmem:[#allocation3 + $0x20] sm:$0xff]  ;;  %s2925_s6 = smov [#allocation15]  }
  0x80   :  { %v138_v9 = vcombine.high %v122_v2, %v122_v2  ;;  %v159_v10 = vsel %vm153_vm0, %v122_v2, 0.0  ;;  %v140_v11 = vcombine.high %v124_v7, %v124_v7  ;;  %v126_v12 = vld [vmem:[#allocation3 + $0x28] sm:$0xff]  ;;  %v169_v15 = vsel %vm153_vm0, %v124_v7, 0.0  ;;  %v127_v21 = vld [vmem:[#allocation3 + $0x30] sm:$0xff]  ;;  %v128_v22 = vld [vmem:[#allocation3 + $0x38] sm:$0xff]  ;;  %s2013_s13 = sshll.u32 %s2925_s6, 4  ;;  %s2014_s13 = int_to_ptr.vmem [resolvable:$true] %s2013_s13 }
  0x81   :  { %v155_v13 = vsel %vm153_vm0, %v137_v3, 0.0  ;;  %v165_v14 = vsel %vm153_vm0, %v139_v5, 0.0  ;;  %v141_v16 = vcombine.high %v125_v8, %v125_v8  ;;  %v142_v23 = vcombine.high %v126_v12, %v126_v12  ;;  %v258_v41 = vld [vmem:[#allocation6] sm:$0xff]  ;;  %v259_v42 = vld [vmem:[#allocation6 + $0x8] sm:$0xff]  ;;  %v260_v45 = vld [vmem:[#allocation6 + $0x10] sm:$0xff]  ;;  %s2879_s3 = scalar_lea.vmem %s2014_s13, 256  ;;  %p2884_p1 = scmp.lt.s32.totalorder %s2014_s13, %s2014_s13 }
  0x82   :  { %v156_v17 = vadd.f32 %v155_v13, %v154_v4  ;;  %v166_v18 = vadd.f32 %v165_v14, %v164_v6  ;;  %v160_v19 = vsel %vm153_vm0, %v138_v9, 0.0  ;;  %v170_v20 = vsel %vm153_vm0, %v140_v11, 0.0  ;;  %v3081_v46 = vld [vmem:[#allocation6 + $0x18] sm:$0xff]  ;;  %v616_v14 = vld [vmem:[#allocation9 + $0x8] sm:$0xff]  ;;  %p2880_p0 = scmp.ne.s32.totalorder %s2014_s13, %s2879_s3  ;;  %p2885_p2 = scmp.lt.s32.totalorder %s2879_s3, %s2879_s3 }
  0x83   :  { %v161_v24 = vadd.f32 %v160_v19, %v159_v10  ;;  %v171_v25 = vadd.f32 %v170_v20, %v169_v15  ;;  %v174_v26 = vsel %vm153_vm0, %v125_v8, 0.0  ;;  %v175_v27 = vsel %vm153_vm0, %v141_v16, 0.0  ;;  %v620_v15 = vld [vmem:[#allocation9 + $0x28] sm:$0xff]  ;;  %v619_v19 = vld [vmem:[#allocation9 + $0x20] sm:$0xff] }
  0x84   :  { %157 = vadd.xlane.f32.xlu0 %v156_v17  ;;  %167 = vadd.xlane.f32.xlu1 %v166_v18  ;;  %v179_v28 = vsel %vm153_vm0, %v126_v12, 0.0  ;;  %v180_v29 = vsel %vm153_vm0, %v142_v23, 0.0  ;;  %v143_v30 = vcombine.high %v127_v21, %v127_v21  ;;  %v144_v31 = vcombine.high %v128_v22, %v128_v22  ;;  %v744_v16 = vld [vmem:[#allocation9 + $0x408] sm:$0xff]  ;;  %v615_v18 = vld [vmem:[#allocation9] sm:$0xff]  ;;  %p2886_p3 = por %p2885_p2, %p2884_p1 }
  0x85   :  { %v176_v32 = vadd.f32 %v175_v27, %v174_v26  ;;  %v181_v33 = vadd.f32 %v180_v29, %v179_v28  ;;  %v184_v34 = vsel %vm153_vm0, %v127_v21, 0.0  ;;  %v189_v36 = vsel %vm153_vm0, %v128_v22, 0.0  ;;  %v748_v17 = vld [vmem:[#allocation9 + $0x428] sm:$0xff]  ;;  %v743_v20 = vld [vmem:[#allocation9 + $0x400] sm:$0xff] }
  0x86   :  { %v185_v35 = vsel %vm153_vm0, %v143_v30, 0.0  ;;  %v190_v37 = vsel %vm153_vm0, %v144_v31, 0.0  ;;  %v2924_v40 = vmov 0.0   ;;  %v308_v43 = vcombine.high %v258_v41, %v258_v41  ;;  %v747_v21 = vld [vmem:[#allocation9 + $0x420] sm:$0xff]  ;;  %v624_v22 = vld [vmem:[#allocation9 + $0x48] sm:$0xff]  ;;  %p2887_p4 = pnand %p2886_p3, %p2880_p0 }
  0x87   :  { %v186_v38 = vadd.f32 %v185_v35, %v184_v34  ;;  %v191_v39 = vadd.f32 %v190_v37, %v189_v36  ;;  %119 = vst.msk [vmem:[#allocation2] sm:$0xff] %vm118_vm1, %v2924_v40  ;;  %395 = vmatprep.mubr.f32.mxu0 %v2924_v40  ;;  %466 = vmatprep.mubr.f32.mxu1 %v2924_v40  ;;  %v203_v50 = vand.u32 127, %v202_v49  ;;  %v3087_v51 = vshrl.u32 %v202_v49, 7  ;;  %v628_v23 = vld [vmem:[#allocation9 + $0x68] sm:$0xff]  ;;  %v623_v31 = vld [vmem:[#allocation9 + $0x40] sm:$0xff] }
  0x88   :  { %162 = vadd.xlane.f32.xlu0 %v161_v24  ;;  %172 = vadd.xlane.f32.xlu1 %v171_v25  ;;  %v309_v44 = vcombine.high %v259_v42, %v259_v42  ;;  %v310_v47 = vcombine.high %v260_v45, %v260_v45  ;;  %v311_v48 = vcombine.high %v3081_v46, %v3081_v46  ;;  %vm236_vm2 = vcmask 1041409   ;;  %v752_v27 = vld [vmem:[#allocation9 + $0x448] sm:$0xff]  ;;  %v751_v35 = vld [vmem:[#allocation9 + $0x440] sm:$0xff] }
  0x89   :  { %2025 = vmatprep.subr.msk.mxu0 %vm153_vm0, %v308_v43  ;;  %v206_v54 = vsub.s32 %v203_v50, %v3087_v51  ;;  %vm238_vm3 = vcmask 1042434   ;;  %vm240_vm4 = vcmask 1043459   ;;  %vm242_vm5 = vcmask 1044484   ;;  %v756_v28 = vld [vmem:[#allocation9 + $0x468] sm:$0xff]  ;;  %v755_v36 = vld [vmem:[#allocation9 + $0x460] sm:$0xff] }
  0x8a   :  { %2028 = vmatprep.subr.msk.mxu1 %vm153_vm0, %v309_v44  ;;  %2026 = vmatpush1.msk.msra.mxu0 %vm153_vm0, %v258_v41  ;;  %vm244_vm6 = vcmask 1045509   ;;  %vm246_vm7 = vcmask 1046534   ;;  %vm248_vm8 = vcmask 1047559   ;;  %v2037_v25 = vpack.c.bf16 %v620_v15, %v616_v14  ;;  %v632_v37 = vld [vmem:[#allocation9 + $0x88] sm:$0xff]  ;;  %v631_v44 = vld [vmem:[#allocation9 + $0x80] sm:$0xff] }
  0x8b   :  { %2029 = vmatpush1.msk.msra.mxu1 %vm153_vm0, %v259_v42  ;;  %2031 = vmatprep.subr.msk.mxu0 %vm153_vm0, %v310_v47  ;;  %v2101_v26 = vpack.c.bf16 %v748_v17, %v744_v16  ;;  %v2039_v29 = vpack.c.bf16 %v619_v19, %v615_v18  ;;  %v2103_v30 = vpack.c.bf16 %v747_v21, %v743_v20  ;;  %v764_v41 = vld [vmem:[#allocation9 + $0x4a8] sm:$0xff]  ;;  %v759_v47 = vld [vmem:[#allocation9 + $0x480] sm:$0xff] }
  0x8c   :  { %177 = vadd.xlane.f32.xlu0 %v176_v32  ;;  %182 = vadd.xlane.f32.xlu1 %v181_v33  ;;  %v627_v32 = vld [vmem:[#allocation9 + $0x60] sm:$0xff]  ;;  %v2041_v33 = vpack.c.bf16 %v628_v23, %v624_v22  ;;  %v2105_v34 = vpack.c.bf16 %v756_v28, %v752_v27  ;;  %v2107_v43 = vpack.c.bf16 %v755_v36, %v751_v35  ;;  %v640_v49 = vld [vmem:[#allocation9 + $0xc8] sm:$0xff] }
  0x8d   :  { %2034 = vmatprep.subr.msk.mxu1 %vm153_vm0, %v311_v48  ;;  %v2043_v42 = vpack.c.bf16 %v627_v32, %v623_v31  ;;  %v763_v48 = vld [vmem:[#allocation9 + $0x4a0] sm:$0xff]  ;;  %v644_v50 = vld [vmem:[#allocation9 + $0xe8] sm:$0xff] }
  0x8e   :  { %v120_v10 = vld [vmem:[#allocation2] sm:$0xff]  ;;  %v655_v16 = vld [vmem:[#allocation9 + $0x140] sm:$0xff]  ;;  %v664_v22 = vld [vmem:[#allocation9 + $0x188] sm:$0xff] }
  0x8f   :  { %v659_v17 = vld [vmem:[#allocation9 + $0x160] sm:$0xff]  ;;  %v668_v23 = vld [vmem:[#allocation9 + $0x1a8] sm:$0xff] }
  0x90   :  { %187 = vadd.xlane.f32.xlu0 %v186_v38  ;;  %192 = vadd.xlane.f32.xlu1 %v191_v39  ;;  %v636_v38 = vld [vmem:[#allocation9 + $0xa8] sm:$0xff]  ;;  %v783_v20 = vld [vmem:[#allocation9 + $0x540] sm:$0xff] }
  0x91   :  { %v760_v39 = vld [vmem:[#allocation9 + $0x488] sm:$0xff]  ;;  %v787_v21 = vld [vmem:[#allocation9 + $0x560] sm:$0xff] }
  0x92   :  { %v2123_v27 = vpack.c.bf16 %v787_v21, %v783_v20  ;;  %v663_v28 = vld [vmem:[#allocation9 + $0x180] sm:$0xff]  ;;  %v676_v35 = vld [vmem:[#allocation9 + $0x1e8] sm:$0xff] }
  0x93   :  { %v791_v32 = vld [vmem:[#allocation9 + $0x580] sm:$0xff]  ;;  %v800_v36 = vld [vmem:[#allocation9 + $0x5c8] sm:$0xff] }
  0x94   :  { %v708_v20 = vld [vmem:[#allocation9 + $0x2e8] sm:$0xff] }
  0x95   :  { %v832_v21 = vld [vmem:[#allocation9 + $0x6c8] sm:$0xff] }
 0x111   :  { %v158_v52 = vpop.xlane.xlu0 %157  ;;  %v168_v53 = vpop.xlane.xlu1 %167 }
 0x112   :  { %v207_v57 = vrot.slane %v158_v52, %v206_v54  ;;  %v215_v60 = vrot.slane %v168_v53, %v206_v54  ;;  %v768_v52 = vld [vmem:[#allocation9 + $0x4c8] sm:$0xff] }
 0x113   :  { %v772_v53 = vld [vmem:[#allocation9 + $0x4e8] sm:$0xff] }
 0x115   :  { %v163_v55 = vpop.xlane.xlu0 %162  ;;  %v173_v56 = vpop.xlane.xlu1 %172 }
 0x116   :  { %v211_v58 = vrot.slane %v163_v55, %v206_v54  ;;  %v219_v59 = vrot.slane %v173_v56, %v206_v54  ;;  %v2111_v55 = vpack.c.bf16 %v763_v48, %v759_v47  ;;  %v639_v56 = vld [vmem:[#allocation9 + $0xc0] sm:$0xff]  ;;  %v684_v47 = vld [vmem:[#allocation9 + $0x228] sm:$0xff] }
 0x117   :  { %v808_v48 = vld [vmem:[#allocation9 + $0x608] sm:$0xff] }
 0x118   :  { %v237_v61 = vsel %vm236_vm2, %v211_v58, %v207_v57  ;;  %v643_v57 = vld [vmem:[#allocation9 + $0xe0] sm:$0xff]  ;;  %v2049_v58 = vpack.c.bf16 %v644_v50, %v640_v49  ;;  %v812_v49 = vld [vmem:[#allocation9 + $0x628] sm:$0xff] }
 0x119   :  { %v239_v62 = vsel %vm238_vm3, %v215_v60, %v237_v61  ;;  %v178_v63 = vpop.xlane.xlu0 %177  ;;  %v183_v0 = vpop.xlane.xlu1 %182  ;;  %v767_v60 = vld [vmem:[#allocation9 + $0x4c0] sm:$0xff] }
 0x11a   :  { %v241_v1 = vsel %vm240_vm4, %v219_v59, %v239_v62  ;;  %v223_v2 = vrot.slane %v178_v63, %v206_v54  ;;  %v227_v3 = vrot.slane %v183_v0, %v206_v54  ;;  %v2113_v59 = vpack.c.bf16 %v772_v53, %v768_v52  ;;  %v771_v61 = vld [vmem:[#allocation9 + $0x4e0] sm:$0xff]  ;;  %v648_v62 = vld [vmem:[#allocation9 + $0x108] sm:$0xff] }
 0x11b   :  { %v652_v63 = vld [vmem:[#allocation9 + $0x128] sm:$0xff]  ;;  %v679_v53 = vld [vmem:[#allocation9 + $0x200] sm:$0xff] }
 0x11c   :  { %v243_v4 = vsel %vm242_vm5, %v223_v2, %v241_v1  ;;  %v776_v0 = vld [vmem:[#allocation9 + $0x508] sm:$0xff]  ;;  %v2051_v2 = vpack.c.bf16 %v643_v57, %v639_v56  ;;  %v2133_v56 = vpack.c.bf16 %v812_v49, %v808_v48  ;;  %v807_v57 = vld [vmem:[#allocation9 + $0x600] sm:$0xff] }
 0x11d   :  { %v188_v5 = vpop.xlane.xlu0 %187  ;;  %v193_v6 = vpop.xlane.xlu1 %192  ;;  %v245_v9 = vsel %vm244_vm6, %v227_v3, %v243_v4  ;;  %v780_v1 = vld [vmem:[#allocation9 + $0x528] sm:$0xff]  ;;  %v2115_v3 = vpack.c.bf16 %v771_v61, %v767_v60  ;;  %v647_v4 = vld [vmem:[#allocation9 + $0x100] sm:$0xff] }
 0x11e   :  { %v231_v7 = vrot.slane %v188_v5, %v206_v54  ;;  %v235_v8 = vrot.slane %v193_v6, %v206_v54  ;;  %v651_v5 = vld [vmem:[#allocation9 + $0x120] sm:$0xff]  ;;  %v2053_v6 = vpack.c.bf16 %v652_v63, %v648_v62  ;;  %v692_v60 = vld [vmem:[#allocation9 + $0x268] sm:$0xff] }
 0x11f   :  { %v2055_v14 = vpack.c.bf16 %v651_v5, %v647_v4  ;;  %v816_v61 = vld [vmem:[#allocation9 + $0x648] sm:$0xff]  ;;  %v815_v5 = vld [vmem:[#allocation9 + $0x640] sm:$0xff] }
 0x120   :  { %v247_v11 = vsel %vm246_vm7, %v231_v7, %v245_v9  ;;  %v2117_v7 = vpack.c.bf16 %v780_v1, %v776_v0  ;;  %v779_v9 = vld [vmem:[#allocation9 + $0x520] sm:$0xff]  ;;  %v820_v62 = vld [vmem:[#allocation9 + $0x668] sm:$0xff] }
 0x121   :  { %v249_v12 = vsel %vm248_vm8, %v235_v8, %v247_v11  ;;  %v775_v8 = vld [vmem:[#allocation9 + $0x500] sm:$0xff]  ;;  %v660_v11 = vld [vmem:[#allocation9 + $0x168] sm:$0xff]  ;;  %v2137_v4 = vpack.c.bf16 %v820_v62, %v816_v61 }
 0x122   :  { %v251_v13 = vadd.f32 %v249_v12, %v120_v10  ;;  %v656_v10 = vld [vmem:[#allocation9 + $0x148] sm:$0xff]  ;;  %v2119_v15 = vpack.c.bf16 %v779_v9, %v775_v8  ;;  %v687_v1 = vld [vmem:[#allocation9 + $0x240] sm:$0xff] }
 0x123   :  { %v784_v12 = vld [vmem:[#allocation9 + $0x548] sm:$0xff]  ;;  %v2057_v18 = vpack.c.bf16 %v660_v11, %v656_v10  ;;  %v719_v49 = vld [vmem:[#allocation9 + $0x340] sm:$0xff] }
 0x124   :  { %253 = vst.msk [vmem:[#allocation2] sm:$0xff] %vm118_vm1, %v251_v13  ;;  %v788_v13 = vld [vmem:[#allocation9 + $0x568] sm:$0xff]  ;;  %v727_v62 = vld [vmem:[#allocation9 + $0x380] sm:$0xff] }
 0x125   :  { %v2121_v19 = vpack.c.bf16 %v788_v13, %v784_v12  ;;  %v700_v8 = vld [vmem:[#allocation9 + $0x2a8] sm:$0xff]  ;;  %v695_v13 = vld [vmem:[#allocation9 + $0x280] sm:$0xff] }
 0x126   :  { %v824_v9 = vld [vmem:[#allocation9 + $0x688] sm:$0xff] }
 0x127   :  { %v828_v10 = vld [vmem:[#allocation9 + $0x6a8] sm:$0xff] }
 0x12b   :  { %v257_v24 = vld [vmem:[#allocation2] sm:$0xff] }
 0x12c   :  { %2027 = vmatmul.mubr.msk.f32.vlgmr.msra.gmra.mrb[0].mxu0 %vm118_vm1, %v257_v24  ;;  %2030 = vmatmul.mubr.msk.f32.vlgmr.msra.gmra.mrb[0].mxu1 %vm118_vm1, %v257_v24 }
 0x12d   :  { %2032 = vmatpush1.msk.msra.mxu0 %vm153_vm0, %v260_v45  ;;  %537 = vmatprep.mubr.f32.mxu0 %v2924_v40  ;;  %v2045_v45 = vpack.c.bf16 %v636_v38, %v632_v37  ;;  %v804_v37 = vld [vmem:[#allocation9 + $0x5e8] sm:$0xff] }
 0x12e   :  { %2035 = vmatpush1.msk.msra.mxu1 %vm153_vm0, %v3081_v46  ;;  %608 = vmatprep.mubr.f32.mxu1 %v2924_v40  ;;  %v635_v40 = vld [vmem:[#allocation9 + $0xa0] sm:$0xff]  ;;  %v2109_v46 = vpack.c.bf16 %v764_v41, %v760_v39 }
 0x12f   :  { %2038 = vmatprep.subr.bf16.mxu1 %v2037_v25  ;;  %2102 = vmatprep.subr.bf16.mxu0 %v2101_v26  ;;  %v2047_v54 = vpack.c.bf16 %v635_v40, %v631_v44  ;;  %v796_v25 = vld [vmem:[#allocation9 + $0x5a8] sm:$0xff]  ;;  %v2059_v26 = vpack.c.bf16 %v659_v17, %v655_v16  ;;  %v671_v41 = vld [vmem:[#allocation9 + $0x1c0] sm:$0xff]  ;;  %v2129_v44 = vpack.c.bf16 %v804_v37, %v800_v36 }
 0x130   :  { %2033 = vmatmul.mubr.msk.f32.vlgmr.msra.gmra.mrb[2].mxu0 %vm118_vm1, %v257_v24  ;;  %2036 = vmatmul.mubr.msk.f32.vlgmr.msra.gmra.mrb[2].mxu1 %vm118_vm1, %v257_v24  ;;  %v792_v24 = vld [vmem:[#allocation9 + $0x588] sm:$0xff]  ;;  %v799_v40 = vld [vmem:[#allocation9 + $0x5c0] sm:$0xff]  ;;  %v2141_v16 = vpack.c.bf16 %v828_v10, %v824_v9 }
 0x131   :  { %2040 = vmatpush1.bf16.msra.mxu1 %v2039_v29  ;;  %2104 = vmatpush1.bf16.msra.mxu0 %v2103_v30  ;;  %v667_v29 = vld [vmem:[#allocation9 + $0x1a0] sm:$0xff]  ;;  %v2061_v30 = vpack.c.bf16 %v668_v23, %v664_v22  ;;  %v2125_v31 = vpack.c.bf16 %v796_v25, %v792_v24  ;;  %v836_v22 = vld [vmem:[#allocation9 + $0x6e8] sm:$0xff] }
 0x132   :  { %2042 = vmatprep.subr.bf16.mxu1 %v2041_v33  ;;  %2106 = vmatprep.subr.bf16.mxu0 %v2105_v34  ;;  %v795_v33 = vld [vmem:[#allocation9 + $0x5a0] sm:$0xff]  ;;  %v672_v34 = vld [vmem:[#allocation9 + $0x1c8] sm:$0xff]  ;;  %v2063_v38 = vpack.c.bf16 %v667_v29, %v663_v28  ;;  %v2145_v28 = vpack.c.bf16 %v836_v22, %v832_v21  ;;  %v622_v22 = vld [vmem:[#allocation9 + $0x38] sm:$0xff] }
 0x133   :  { %v2127_v39 = vpack.c.bf16 %v795_v33, %v791_v32  ;;  %v823_v17 = vld [vmem:[#allocation9 + $0x680] sm:$0xff]  ;;  %v716_v32 = vld [vmem:[#allocation9 + $0x328] sm:$0xff] }
 0x134   :  { %v703_v25 = vld [vmem:[#allocation9 + $0x2c0] sm:$0xff]  ;;  %v840_v33 = vld [vmem:[#allocation9 + $0x708] sm:$0xff] }
 0x135   :  { %2044 = vmatpush1.bf16.msra.mxu1 %v2043_v42  ;;  %2108 = vmatpush1.bf16.msra.mxu0 %v2107_v43  ;;  %v675_v42 = vld [vmem:[#allocation9 + $0x1e0] sm:$0xff]  ;;  %v2065_v43 = vpack.c.bf16 %v676_v35, %v672_v34  ;;  %v844_v34 = vld [vmem:[#allocation9 + $0x728] sm:$0xff] }
 0x136   :  { %2046 = vmatprep.subr.bf16.mxu1 %v2045_v45  ;;  %2110 = vmatprep.subr.bf16.mxu0 %v2109_v46  ;;  %v803_v45 = vld [vmem:[#allocation9 + $0x5e0] sm:$0xff]  ;;  %v680_v46 = vld [vmem:[#allocation9 + $0x208] sm:$0xff]  ;;  %v2067_v50 = vpack.c.bf16 %v675_v42, %v671_v41  ;;  %v2149_v41 = vpack.c.bf16 %v844_v34, %v840_v33 }
 0x137   :  { %v2131_v52 = vpack.c.bf16 %v803_v45, %v799_v40  ;;  %v831_v29 = vld [vmem:[#allocation9 + $0x6c0] sm:$0xff]  ;;  %v724_v40 = vld [vmem:[#allocation9 + $0x368] sm:$0xff] }
 0x138   :  { %v711_v37 = vld [vmem:[#allocation9 + $0x300] sm:$0xff]  ;;  %v848_v45 = vld [vmem:[#allocation9 + $0x748] sm:$0xff] }
 0x139   :  { %2048 = vmatpush1.bf16.msra.mxu1 %v2047_v54  ;;  %2112 = vmatpush1.bf16.msra.mxu0 %v2111_v55  ;;  %v683_v54 = vld [vmem:[#allocation9 + $0x220] sm:$0xff]  ;;  %v2069_v55 = vpack.c.bf16 %v684_v47, %v680_v46  ;;  %v852_v46 = vld [vmem:[#allocation9 + $0x768] sm:$0xff] }
 0x13a   :  { %2050 = vmatprep.subr.bf16.mxu1 %v2049_v58  ;;  %2114 = vmatprep.subr.bf16.mxu0 %v2113_v59  ;;  %v811_v58 = vld [vmem:[#allocation9 + $0x620] sm:$0xff]  ;;  %v688_v59 = vld [vmem:[#allocation9 + $0x248] sm:$0xff]  ;;  %v2071_v63 = vpack.c.bf16 %v683_v54, %v679_v53  ;;  %v2153_v53 = vpack.c.bf16 %v852_v46, %v848_v45  ;;  %v626_v45 = vld [vmem:[#allocation9 + $0x58] sm:$0xff] }
 0x13b   :  { %v2135_v0 = vpack.c.bf16 %v811_v58, %v807_v57  ;;  %v839_v42 = vld [vmem:[#allocation9 + $0x700] sm:$0xff]  ;;  %v732_v57 = vld [vmem:[#allocation9 + $0x3a8] sm:$0xff]  ;;  %v630_v46 = vld [vmem:[#allocation9 + $0x78] sm:$0xff] }
 0x13c   :  { %v847_v54 = vld [vmem:[#allocation9 + $0x740] sm:$0xff]  ;;  %v856_v58 = vld [vmem:[#allocation9 + $0x788] sm:$0xff] }
 0x13d   :  { %2052 = vmatpush1.bf16.msra.mxu1 %v2051_v2  ;;  %2116 = vmatpush1.bf16.msra.mxu0 %v2115_v3  ;;  %v691_v2 = vld [vmem:[#allocation9 + $0x260] sm:$0xff]  ;;  %v2073_v3 = vpack.c.bf16 %v692_v60, %v688_v59  ;;  %v860_v59 = vld [vmem:[#allocation9 + $0x7a8] sm:$0xff] }
 0x13e   :  { %2054 = vmatprep.subr.bf16.mxu1 %v2053_v6  ;;  %2118 = vmatprep.subr.bf16.mxu0 %v2117_v7  ;;  %v819_v6 = vld [vmem:[#allocation9 + $0x660] sm:$0xff]  ;;  %v696_v7 = vld [vmem:[#allocation9 + $0x288] sm:$0xff]  ;;  %v2075_v11 = vpack.c.bf16 %v691_v2, %v687_v1 }
 0x13f   :  { %v2139_v12 = vpack.c.bf16 %v819_v6, %v815_v5  ;;  %v731_v1 = vld [vmem:[#allocation9 + $0x3a0] sm:$0xff]  ;;  %v736_v6 = vld [vmem:[#allocation9 + $0x3c8] sm:$0xff] }
 0x140   :  { %v855_v2 = vld [vmem:[#allocation9 + $0x780] sm:$0xff]  ;;  %v868_v10 = vld [vmem:[#allocation9 + $0x7e8] sm:$0xff] }
 0x141   :  { %2056 = vmatpush1.bf16.msra.mxu1 %v2055_v14  ;;  %2120 = vmatpush1.bf16.msra.mxu0 %v2119_v15  ;;  %v699_v14 = vld [vmem:[#allocation9 + $0x2a0] sm:$0xff]  ;;  %v2077_v15 = vpack.c.bf16 %v700_v8, %v696_v7  ;;  %v740_v7 = vld [vmem:[#allocation9 + $0x3e8] sm:$0xff] }
 0x142   :  { %2058 = vmatprep.subr.bf16.mxu1 %v2057_v18  ;;  %2122 = vmatprep.subr.bf16.mxu0 %v2121_v19  ;;  %v827_v18 = vld [vmem:[#allocation9 + $0x6a0] sm:$0xff]  ;;  %v704_v19 = vld [vmem:[#allocation9 + $0x2c8] sm:$0xff]  ;;  %v2079_v23 = vpack.c.bf16 %v699_v14, %v695_v13  ;;  %v2097_v9 = vpack.c.bf16 %v740_v7, %v736_v6 }
 0x143   :  { %v2143_v24 = vpack.c.bf16 %v827_v18, %v823_v17  ;;  %v864_v8 = vld [vmem:[#allocation9 + $0x7c8] sm:$0xff]  ;;  %v875_v33 = vld [vmem:[#allocation9 + $0x820] sm:$0xff] }
 0x144   :  { %v2161_v13 = vpack.c.bf16 %v868_v10, %v864_v8  ;;  %v872_v18 = vld [vmem:[#allocation9 + $0x808] sm:$0xff]  ;;  %v887_v7 = vld [vmem:[#allocation9 + $0x880] sm:$0xff] }
 0x145   :  { %2060 = vmatpush1.bf16.msra.mxu1 %v2059_v26  ;;  %2124 = vmatpush1.bf16.msra.mxu0 %v2123_v27  ;;  %v707_v26 = vld [vmem:[#allocation9 + $0x2e0] sm:$0xff]  ;;  %v2081_v27 = vpack.c.bf16 %v708_v20, %v704_v19  ;;  %v876_v19 = vld [vmem:[#allocation9 + $0x828] sm:$0xff]  ;;  %v618_v20 = vld [vmem:[#allocation9 + $0x18] sm:$0xff] }
 0x146   :  { %2062 = vmatprep.subr.bf16.mxu1 %v2061_v30  ;;  %2126 = vmatprep.subr.bf16.mxu0 %v2125_v31  ;;  %v835_v30 = vld [vmem:[#allocation9 + $0x6e0] sm:$0xff]  ;;  %v712_v31 = vld [vmem:[#allocation9 + $0x308] sm:$0xff]  ;;  %v2083_v35 = vpack.c.bf16 %v707_v26, %v703_v25  ;;  %v2165_v21 = vpack.c.bf16 %v876_v19, %v872_v18  ;;  %v278_v25 = vsub.s32 3, %v3087_v51  ;;  %v3104_v26 = vld [vmem:[#allocation8] sm:$0xff] }
 0x147   :  { %v2147_v36 = vpack.c.bf16 %v835_v30, %v831_v29  ;;  %v891_v8 = vld [vmem:[#allocation9 + $0x8a0] sm:$0xff] }
 0x148   :  { %v279_v30 = vrot.slane %v3104_v26, %v278_v25  ;;  %v895_v19 = vld [vmem:[#allocation9 + $0x8c0] sm:$0xff] }
 0x149   :  { %2064 = vmatpush1.bf16.msra.mxu1 %v2063_v38  ;;  %2128 = vmatpush1.bf16.msra.mxu0 %v2127_v39  ;;  %v715_v38 = vld [vmem:[#allocation9 + $0x320] sm:$0xff]  ;;  %v2085_v39 = vpack.c.bf16 %v716_v32, %v712_v31  ;;  %v286_v31 = vsub.s32 5, %v3087_v51 }
 0x14a   :  { %2066 = vmatprep.subr.bf16.mxu1 %v2065_v43  ;;  %2130 = vmatprep.subr.bf16.mxu0 %v2129_v44  ;;  %v843_v43 = vld [vmem:[#allocation9 + $0x720] sm:$0xff]  ;;  %v720_v44 = vld [vmem:[#allocation9 + $0x348] sm:$0xff]  ;;  %v2087_v47 = vpack.c.bf16 %v715_v38, %v711_v37  ;;  %v621_v37 = vld [vmem:[#allocation9 + $0x30] sm:$0xff] }
 0x14b   :  { %v2151_v48 = vpack.c.bf16 %v843_v43, %v839_v42  ;;  %v871_v32 = vld [vmem:[#allocation9 + $0x800] sm:$0xff]  ;;  %v884_v42 = vld [vmem:[#allocation9 + $0x868] sm:$0xff] }
 0x14d   :  { %2068 = vmatpush1.bf16.msra.mxu1 %v2067_v50  ;;  %2132 = vmatpush1.bf16.msra.mxu0 %v2131_v52  ;;  %v723_v50 = vld [vmem:[#allocation9 + $0x360] sm:$0xff]  ;;  %v2089_v52 = vpack.c.bf16 %v724_v40, %v720_v44  ;;  %v2167_v40 = vpack.c.bf16 %v875_v33, %v871_v32  ;;  %v650_v32 = vld [vmem:[#allocation9 + $0x118] sm:$0xff] }
 0x14e   :  { %2070 = vmatprep.subr.bf16.mxu1 %v2069_v55  ;;  %2134 = vmatprep.subr.bf16.mxu0 %v2133_v56  ;;  %v851_v55 = vld [vmem:[#allocation9 + $0x760] sm:$0xff]  ;;  %v728_v56 = vld [vmem:[#allocation9 + $0x388] sm:$0xff]  ;;  %v2091_v60 = vpack.c.bf16 %v723_v50, %v719_v49  ;;  %v287_v49 = vrot.slane %v3104_v26, %v286_v31  ;;  %v654_v33 = vld [vmem:[#allocation9 + $0x138] sm:$0xff] }
 0x14f   :  { %v2155_v61 = vpack.c.bf16 %v851_v55, %v847_v54  ;;  %v908_v31 = vld [vmem:[#allocation9 + $0x928] sm:$0xff] }
 0x151   :  { %2072 = vmatpush1.bf16.msra.mxu1 %v2071_v63  ;;  %2136 = vmatpush1.bf16.msra.mxu0 %v2135_v0  ;;  %v2093_v63 = vpack.c.bf16 %v732_v57, %v728_v56  ;;  %v2157_v0 = vpack.c.bf16 %v860_v59, %v856_v58  ;;  %v625_v57 = vld [vmem:[#allocation9 + $0x50] sm:$0xff]  ;;  %v888_v59 = vld [vmem:[#allocation9 + $0x888] sm:$0xff] }
 0x152   :  { %2074 = vmatprep.subr.bf16.mxu1 %v2073_v3  ;;  %2138 = vmatprep.subr.bf16.mxu0 %v2137_v4  ;;  %v859_v3 = vld [vmem:[#allocation9 + $0x7a0] sm:$0xff]  ;;  %v2095_v4 = vpack.c.bf16 %v731_v1, %v727_v62  ;;  %v629_v58 = vld [vmem:[#allocation9 + $0x70] sm:$0xff]  ;;  %v2297_v62 = vpack.c.bf16 %v630_v46, %v626_v45  ;;  %v638_v1 = vld [vmem:[#allocation9 + $0xb8] sm:$0xff] }
 0x153   :  { %v2159_v5 = vpack.c.bf16 %v859_v3, %v855_v2  ;;  %v2299_v6 = vpack.c.bf16 %v629_v58, %v625_v57  ;;  %v662_v45 = vld [vmem:[#allocation9 + $0x178] sm:$0xff]  ;;  %v661_v57 = vld [vmem:[#allocation9 + $0x170] sm:$0xff]  ;;  %v920_v58 = vld [vmem:[#allocation9 + $0x988] sm:$0xff] }
 0x155   :  { %2076 = vmatpush1.bf16.msra.mxu1 %v2075_v11  ;;  %2140 = vmatpush1.bf16.msra.mxu0 %v2139_v12  ;;  %v735_v11 = vld [vmem:[#allocation9 + $0x3c0] sm:$0xff] }
 0x156   :  { %2078 = vmatprep.subr.bf16.mxu1 %v2077_v15  ;;  %2142 = vmatprep.subr.bf16.mxu0 %v2141_v16  ;;  %v739_v12 = vld [vmem:[#allocation9 + $0x3e0] sm:$0xff] }
 0x157   :  { %v2099_v14 = vpack.c.bf16 %v739_v12, %v735_v11  ;;  %v863_v15 = vld [vmem:[#allocation9 + $0x7c0] sm:$0xff]  ;;  %v633_v11 = vld [vmem:[#allocation9 + $0x90] sm:$0xff] }
 0x158   :  { %v867_v16 = vld [vmem:[#allocation9 + $0x7e0] sm:$0xff]  ;;  %v637_v12 = vld [vmem:[#allocation9 + $0xb0] sm:$0xff] }
 0x159   :  { %2080 = vmatpush1.bf16.msra.mxu1 %v2079_v23  ;;  %2144 = vmatpush1.bf16.msra.mxu0 %v2143_v24  ;;  %v2163_v17 = vpack.c.bf16 %v867_v16, %v863_v15  ;;  %v2293_v23 = vpack.c.bf16 %v622_v22, %v618_v20  ;;  %v3101_v24 = vsub.s32 1, %v3087_v51  ;;  %v642_v15 = vld [vmem:[#allocation9 + $0xd8] sm:$0xff]  ;;  %v2303_v18 = vpack.c.bf16 %v637_v12, %v633_v11  ;;  %v899_v20 = vld [vmem:[#allocation9 + $0x8e0] sm:$0xff]  ;;  %v932_v11 = vld [vmem:[#allocation9 + $0x9e8] sm:$0xff] }
 0x15a   :  { %2082 = vmatprep.subr.bf16.mxu1 %v2081_v27  ;;  %2146 = vmatprep.subr.bf16.mxu0 %v2145_v28  ;;  %v3107_v27 = vsub.s32 0, %v3087_v51  ;;  %v274_v28 = vsub.s32 2, %v3087_v51  ;;  %v646_v16 = vld [vmem:[#allocation9 + $0xf8] sm:$0xff] }
 0x15b   :  { %v271_v29 = vrot.slane %v3104_v26, %v3101_v24  ;;  %v2305_v22 = vpack.c.bf16 %v646_v16, %v642_v15  ;;  %v674_v12 = vld [vmem:[#allocation9 + $0x1d8] sm:$0xff]  ;;  %v927_v16 = vld [vmem:[#allocation9 + $0x9c0] sm:$0xff] }
 0x15c   :  { %v267_v34 = vrot.slane %v3104_v26, %v3107_v27 }
 0x15d   :  { %2084 = vmatpush1.bf16.msra.mxu1 %v2083_v35  ;;  %2148 = vmatpush1.bf16.msra.mxu0 %v2147_v36  ;;  %v275_v35 = vrot.slane %v3104_v26, %v274_v28  ;;  %v617_v36 = vld [vmem:[#allocation9 + $0x10] sm:$0xff] }
 0x15e   :  { %2086 = vmatprep.subr.bf16.mxu1 %v2085_v39  ;;  %2150 = vmatprep.subr.bf16.mxu0 %v2149_v41  ;;  %v880_v41 = vld [vmem:[#allocation9 + $0x848] sm:$0xff]  ;;  %v2295_v50 = vpack.c.bf16 %v621_v37, %v617_v36  ;;  %v903_v36 = vld [vmem:[#allocation9 + $0x900] sm:$0xff] }
 0x15f   :  { %v2169_v56 = vpack.c.bf16 %v884_v42, %v880_v41  ;;  %v907_v37 = vld [vmem:[#allocation9 + $0x920] sm:$0xff]  ;;  %v649_v41 = vld [vmem:[#allocation9 + $0x110] sm:$0xff] }
 0x160   :  { %v653_v42 = vld [vmem:[#allocation9 + $0x130] sm:$0xff]  ;;  %v2183_v46 = vpack.c.bf16 %v907_v37, %v903_v36 }
 0x161   :  { %2088 = vmatpush1.bf16.msra.mxu1 %v2087_v47  ;;  %2152 = vmatpush1.bf16.msra.mxu0 %v2151_v48  ;;  %v681_v37 = vld [vmem:[#allocation9 + $0x210] sm:$0xff] }
 0x162   :  { %2090 = vmatprep.subr.bf16.mxu1 %v2089_v52  ;;  %2154 = vmatprep.subr.bf16.mxu0 %v2153_v53  ;;  %v879_v52 = vld [vmem:[#allocation9 + $0x840] sm:$0xff] }
 0x163   :  { %v883_v53 = vld [vmem:[#allocation9 + $0x860] sm:$0xff] }
 0x165   :  { %2092 = vmatpush1.bf16.msra.mxu1 %v2091_v60  ;;  %2156 = vmatpush1.bf16.msra.mxu0 %v2155_v61 }
 0x166   :  { %2094 = vmatprep.subr.bf16.mxu1 %v2093_v63  ;;  %2158 = vmatprep.subr.bf16.mxu0 %v2157_v0  ;;  %v892_v63 = vld [vmem:[#allocation9 + $0x8a8] sm:$0xff]  ;;  %v634_v0 = vld [vmem:[#allocation9 + $0x98] sm:$0xff] }
 0x167   :  { %v2301_v10 = vpack.c.bf16 %v638_v1, %v634_v0 }
 0x169   :  { %2096 = vmatpush1.bf16.msra.mxu1 %v2095_v4  ;;  %2160 = vmatpush1.bf16.msra.mxu0 %v2159_v5  ;;  %v2171_v5 = vpack.c.bf16 %v883_v53, %v879_v52 }
 0x16a   :  { %2098 = vmatprep.subr.bf16.mxu1 %v2097_v9  ;;  %2162 = vmatprep.subr.bf16.mxu0 %v2161_v13  ;;  %v2173_v9 = vpack.c.bf16 %v892_v63, %v888_v59  ;;  %v896_v13 = vld [vmem:[#allocation9 + $0x8c8] sm:$0xff]  ;;  %v670_v63 = vld [vmem:[#allocation9 + $0x1b8] sm:$0xff] }
 0x16b   :  { %v924_v59 = vld [vmem:[#allocation9 + $0x9a8] sm:$0xff] }
 0x16d   :  { %2100 = vmatpush1.bf16.msra.mxu1 %v2099_v14  ;;  %2164 = vmatpush1.bf16.msra.mxu0 %v2163_v17  ;;  %v900_v14 = vld [vmem:[#allocation9 + $0x8e8] sm:$0xff]  ;;  %v2175_v17 = vpack.c.bf16 %v891_v8, %v887_v7  ;;  %v665_v8 = vld [vmem:[#allocation9 + $0x190] sm:$0xff] }
 0x16e   :  { %2166 = vmatprep.subr.bf16.mxu0 %v2165_v21  ;;  %2294 = vmatprep.subr.bf16.mxu1 %v2293_v23  ;;  %v2177_v21 = vpack.c.bf16 %v900_v14, %v896_v13  ;;  %v641_v23 = vld [vmem:[#allocation9 + $0xd0] sm:$0xff]  ;;  %v678_v13 = vld [vmem:[#allocation9 + $0x1f8] sm:$0xff] }
 0x1ff   :  { %v397_v38 = vpop.f32.mrb[0].mxu0  ;;  %v468_v39 = vpop.f32.mrb[0].mxu1 }
 0x200   :  { %v399_v43 = vpop.f32.mrb[1].mxu0  ;;  %v470_v44 = vpop.f32.mrb[1].mxu1  ;;  %v3124_v54 = vadd.f32 %v397_v38, %v267_v34  ;;  %v3126_v55 = vadd.f32 %v468_v39, %v275_v35  ;;  %v2179_v34 = vpack.c.bf16 %v899_v20, %v895_v19  ;;  %v2309_v39 = vpack.c.bf16 %v654_v33, %v650_v32  ;;  %v673_v20 = vld [vmem:[#allocation9 + $0x1d0] sm:$0xff]  ;;  %v935_v33 = vld [vmem:[#allocation9 + $0xa00] sm:$0xff] }
 0x201   :  { %v400_v47 = vadd.f32 %v399_v43, %v271_v29  ;;  %v3121_v48 = vadd.f32 %v470_v44, %v279_v30  ;;  %v645_v29 = vld [vmem:[#allocation9 + $0xf0] sm:$0xff]  ;;  %v904_v30 = vld [vmem:[#allocation9 + $0x908] sm:$0xff]  ;;  %v2321_v19 = vpack.c.bf16 %v678_v13, %v674_v12  ;;  %v959_v13 = vld [vmem:[#allocation9 + $0xac0] sm:$0xff] }
 0x202   :  { %v2307_v35 = vpack.c.bf16 %v645_v29, %v641_v23  ;;  %v2181_v38 = vpack.c.bf16 %v908_v31, %v904_v30  ;;  %v912_v43 = vld [vmem:[#allocation9 + $0x948] sm:$0xff]  ;;  %v682_v29 = vld [vmem:[#allocation9 + $0x218] sm:$0xff] }
 0x203   :  { %v3128_v60 = vpop.f32.mrb[2].mxu0  ;;  %v3130_v61 = vpop.f32.mrb[2].mxu1  ;;  %1213 = vmatprep.mubr.f32.mxu1 %v400_v47  ;;  %1284 = vmatprep.mubr.f32.mxu0 %v3121_v48  ;;  %v916_v44 = vld [vmem:[#allocation9 + $0x968] sm:$0xff]  ;;  %v686_v30 = vld [vmem:[#allocation9 + $0x238] sm:$0xff] }
 0x204   :  { %v541_v2 = vpop.f32.mrb[3].mxu0  ;;  %v3133_v3 = vpop.f32.mrb[3].mxu1  ;;  %1214 = vmatmul.mubr.f32.vlgmr.msra.gmra.mrb[4].mxu1 %v3124_v54  ;;  %1285 = vmatmul.mubr.f32.vlgmr.msra.gmra.mrb[4].mxu0 %v3126_v55  ;;  %v2185_v52 = vpack.c.bf16 %v916_v44, %v912_v43  ;;  %v940_v23 = vld [vmem:[#allocation9 + $0xa28] sm:$0xff]  ;;  %v2325_v36 = vpack.c.bf16 %v686_v30, %v682_v29  ;;  %v694_v43 = vld [vmem:[#allocation9 + $0x278] sm:$0xff]  ;;  %v967_v30 = vld [vmem:[#allocation9 + $0xb00] sm:$0xff] }
 0x205   :  { %v3137_v4 = vadd.f32 %v541_v2, %v287_v49  ;;  %2168 = vmatpush1.bf16.msra.mxu0 %v2167_v40  ;;  %2296 = vmatpush1.bf16.msra.mxu1 %v2295_v50  ;;  %v658_v40 = vld [vmem:[#allocation9 + $0x158] sm:$0xff]  ;;  %v911_v49 = vld [vmem:[#allocation9 + $0x940] sm:$0xff] }
 0x206   :  { %1497 = vmatprep.mubr.f32.mxu1 %v400_v47  ;;  %2170 = vmatprep.subr.bf16.mxu0 %v2169_v56  ;;  %v2311_v47 = vpack.c.bf16 %v653_v42, %v649_v41  ;;  %v915_v50 = vld [vmem:[#allocation9 + $0x960] sm:$0xff]  ;;  %v2313_v53 = vpack.c.bf16 %v662_v45, %v658_v40  ;;  %v657_v56 = vld [vmem:[#allocation9 + $0x150] sm:$0xff]  ;;  %v948_v41 = vld [vmem:[#allocation9 + $0xa68] sm:$0xff] }
 0x207   :  { %1355 = vmatprep.mubr.f32.mxu0 %v3137_v4  ;;  %2298 = vmatprep.subr.bf16.mxu1 %v2297_v62  ;;  %v666_v62 = vld [vmem:[#allocation9 + $0x198] sm:$0xff]  ;;  %v2187_v0 = vpack.c.bf16 %v915_v50, %v911_v49  ;;  %v2315_v1 = vpack.c.bf16 %v661_v57, %v657_v56  ;;  %v919_v2 = vld [vmem:[#allocation9 + $0x980] sm:$0xff]  ;;  %v689_v50 = vld [vmem:[#allocation9 + $0x250] sm:$0xff] }
 0x208   :  { %v2317_v7 = vpack.c.bf16 %v670_v63, %v666_v62  ;;  %v690_v42 = vld [vmem:[#allocation9 + $0x258] sm:$0xff]  ;;  %v943_v45 = vld [vmem:[#allocation9 + $0xa40] sm:$0xff]  ;;  %v956_v56 = vld [vmem:[#allocation9 + $0xaa8] sm:$0xff] }
 0x209   :  { %2172 = vmatpush1.bf16.msra.mxu0 %v2171_v5  ;;  %2300 = vmatpush1.bf16.msra.mxu1 %v2299_v6  ;;  %v923_v5 = vld [vmem:[#allocation9 + $0x9a0] sm:$0xff]  ;;  %v2189_v6 = vpack.c.bf16 %v924_v59, %v920_v58  ;;  %v2329_v49 = vpack.c.bf16 %v694_v43, %v690_v42  ;;  %v698_v57 = vld [vmem:[#allocation9 + $0x298] sm:$0xff] }
 0x20a   :  { %2174 = vmatprep.subr.bf16.mxu0 %v2173_v9  ;;  %2302 = vmatprep.subr.bf16.mxu1 %v2301_v10  ;;  %v669_v9 = vld [vmem:[#allocation9 + $0x1b0] sm:$0xff]  ;;  %v928_v10 = vld [vmem:[#allocation9 + $0x9c8] sm:$0xff]  ;;  %v2191_v14 = vpack.c.bf16 %v923_v5, %v919_v2  ;;  %v702_v58 = vld [vmem:[#allocation9 + $0x2b8] sm:$0xff] }
 0x20b   :  { %v2319_v15 = vpack.c.bf16 %v669_v9, %v665_v8  ;;  %v951_v63 = vld [vmem:[#allocation9 + $0xa80] sm:$0xff]  ;;  %v2333_v2 = vpack.c.bf16 %v702_v58, %v698_v57  ;;  %v697_v5 = vld [vmem:[#allocation9 + $0x290] sm:$0xff]  ;;  %v964_v8 = vld [vmem:[#allocation9 + $0xae8] sm:$0xff] }
 0x20c   :  { %v706_v9 = vld [vmem:[#allocation9 + $0x2d8] sm:$0xff]  ;;  %v975_v43 = vld [vmem:[#allocation9 + $0xb40] sm:$0xff] }
 0x20d   :  { %2176 = vmatpush1.bf16.msra.mxu0 %v2175_v17  ;;  %2304 = vmatpush1.bf16.msra.mxu1 %v2303_v18  ;;  %v931_v17 = vld [vmem:[#allocation9 + $0x9e0] sm:$0xff]  ;;  %v2193_v18 = vpack.c.bf16 %v932_v11, %v928_v10  ;;  %v710_v10 = vld [vmem:[#allocation9 + $0x2f8] sm:$0xff] }
 0x20e   :  { %2178 = vmatprep.subr.bf16.mxu0 %v2177_v21  ;;  %2306 = vmatprep.subr.bf16.mxu1 %v2305_v22  ;;  %v677_v21 = vld [vmem:[#allocation9 + $0x1f0] sm:$0xff]  ;;  %v936_v22 = vld [vmem:[#allocation9 + $0xa08] sm:$0xff]  ;;  %v2195_v31 = vpack.c.bf16 %v931_v17, %v927_v16  ;;  %v2337_v16 = vpack.c.bf16 %v710_v10, %v706_v9  ;;  %v983_v58 = vld [vmem:[#allocation9 + $0xb80] sm:$0xff] }
 0x20f   :  { %v2323_v32 = vpack.c.bf16 %v677_v21, %v673_v20  ;;  %v705_v17 = vld [vmem:[#allocation9 + $0x2d0] sm:$0xff]  ;;  %v972_v20 = vld [vmem:[#allocation9 + $0xb28] sm:$0xff]  ;;  %v714_v21 = vld [vmem:[#allocation9 + $0x318] sm:$0xff] }
 0x210   :  { %v991_v10 = vld [vmem:[#allocation9 + $0xbc0] sm:$0xff] }
 0x211   :  { %2180 = vmatpush1.bf16.msra.mxu0 %v2179_v34  ;;  %2308 = vmatpush1.bf16.msra.mxu1 %v2307_v35  ;;  %v939_v34 = vld [vmem:[#allocation9 + $0xa20] sm:$0xff]  ;;  %v2197_v35 = vpack.c.bf16 %v940_v23, %v936_v22  ;;  %v718_v22 = vld [vmem:[#allocation9 + $0x338] sm:$0xff] }
 0x212   :  { %2182 = vmatprep.subr.bf16.mxu0 %v2181_v38  ;;  %2310 = vmatprep.subr.bf16.mxu1 %v2309_v39  ;;  %v685_v38 = vld [vmem:[#allocation9 + $0x230] sm:$0xff]  ;;  %v944_v39 = vld [vmem:[#allocation9 + $0xa48] sm:$0xff]  ;;  %v2199_v44 = vpack.c.bf16 %v939_v34, %v935_v33  ;;  %v2341_v33 = vpack.c.bf16 %v718_v22, %v714_v21  ;;  %v750_v21 = vld [vmem:[#allocation9 + $0x438] sm:$0xff] }
 0x213   :  { %v2327_v40 = vpack.c.bf16 %v685_v38, %v681_v37  ;;  %v713_v34 = vld [vmem:[#allocation9 + $0x310] sm:$0xff]  ;;  %v980_v37 = vld [vmem:[#allocation9 + $0xb68] sm:$0xff]  ;;  %v722_v38 = vld [vmem:[#allocation9 + $0x358] sm:$0xff] }
 0x215   :  { %2184 = vmatpush1.bf16.msra.mxu0 %v2183_v46  ;;  %2312 = vmatpush1.bf16.msra.mxu1 %v2311_v47  ;;  %v947_v46 = vld [vmem:[#allocation9 + $0xa60] sm:$0xff]  ;;  %v2201_v47 = vpack.c.bf16 %v948_v41, %v944_v39  ;;  %v726_v39 = vld [vmem:[#allocation9 + $0x378] sm:$0xff] }
 0x216   :  { %2186 = vmatprep.subr.bf16.mxu0 %v2185_v52  ;;  %2314 = vmatprep.subr.bf16.mxu1 %v2313_v53  ;;  %v693_v52 = vld [vmem:[#allocation9 + $0x270] sm:$0xff]  ;;  %v952_v53 = vld [vmem:[#allocation9 + $0xa88] sm:$0xff]  ;;  %v2203_v59 = vpack.c.bf16 %v947_v46, %v943_v45  ;;  %v2345_v45 = vpack.c.bf16 %v726_v39, %v722_v38  ;;  %v754_v39 = vld [vmem:[#allocation9 + $0x458] sm:$0xff] }
 0x217   :  { %v2331_v62 = vpack.c.bf16 %v693_v52, %v689_v50  ;;  %v721_v46 = vld [vmem:[#allocation9 + $0x350] sm:$0xff]  ;;  %v988_v50 = vld [vmem:[#allocation9 + $0xba8] sm:$0xff]  ;;  %v730_v52 = vld [vmem:[#allocation9 + $0x398] sm:$0xff] }
 0x218   :  { %v1012_v38 = vld [vmem:[#allocation9 + $0xc68] sm:$0xff] }
 0x219   :  { %2188 = vmatpush1.bf16.msra.mxu0 %v2187_v0  ;;  %2316 = vmatpush1.bf16.msra.mxu1 %v2315_v1  ;;  %v955_v0 = vld [vmem:[#allocation9 + $0xaa0] sm:$0xff]  ;;  %v2205_v1 = vpack.c.bf16 %v956_v56, %v952_v53  ;;  %v734_v53 = vld [vmem:[#allocation9 + $0x3b8] sm:$0xff] }
 0x21a   :  { %2190 = vmatprep.subr.bf16.mxu0 %v2189_v6  ;;  %2318 = vmatprep.subr.bf16.mxu1 %v2317_v7  ;;  %v701_v6 = vld [vmem:[#allocation9 + $0x2b0] sm:$0xff]  ;;  %v960_v7 = vld [vmem:[#allocation9 + $0xac8] sm:$0xff]  ;;  %v2207_v11 = vpack.c.bf16 %v955_v0, %v951_v63  ;;  %v2349_v63 = vpack.c.bf16 %v734_v53, %v730_v52 }
 0x21b   :  { %v2335_v12 = vpack.c.bf16 %v701_v6, %v697_v5  ;;  %v729_v0 = vld [vmem:[#allocation9 + $0x390] sm:$0xff]  ;;  %v996_v5 = vld [vmem:[#allocation9 + $0xbe8] sm:$0xff]  ;;  %v738_v6 = vld [vmem:[#allocation9 + $0x3d8] sm:$0xff] }
 0x21c   :  { %v1016_v52 = vld [vmem:[#allocation9 + $0xc88] sm:$0xff] }
 0x21d   :  { %2192 = vmatpush1.bf16.msra.mxu0 %v2191_v14  ;;  %2320 = vmatpush1.bf16.msra.mxu1 %v2319_v15  ;;  %v963_v14 = vld [vmem:[#allocation9 + $0xae0] sm:$0xff]  ;;  %v2209_v15 = vpack.c.bf16 %v964_v8, %v960_v7  ;;  %v742_v7 = vld [vmem:[#allocation9 + $0x3f8] sm:$0xff]  ;;  %v1020_v53 = vld [vmem:[#allocation9 + $0xca8] sm:$0xff] }
 0x21e   :  { %2194 = vmatprep.subr.bf16.mxu0 %v2193_v18  ;;  %2322 = vmatprep.subr.bf16.mxu1 %v2321_v19  ;;  %v709_v18 = vld [vmem:[#allocation9 + $0x2f0] sm:$0xff]  ;;  %v968_v19 = vld [vmem:[#allocation9 + $0xb08] sm:$0xff]  ;;  %v2211_v23 = vpack.c.bf16 %v963_v14, %v959_v13  ;;  %v2353_v14 = vpack.c.bf16 %v742_v7, %v738_v6  ;;  %v774_v6 = vld [vmem:[#allocation9 + $0x4f8] sm:$0xff] }
 0x21f   :  { %v2339_v29 = vpack.c.bf16 %v709_v18, %v705_v17  ;;  %v1000_v17 = vld [vmem:[#allocation9 + $0xc08] sm:$0xff]  ;;  %v294_v18 = vsub.s32 7, %v3087_v51 }
 0x221   :  { %2196 = vmatpush1.bf16.msra.mxu0 %v2195_v31  ;;  %2324 = vmatpush1.bf16.msra.mxu1 %v2323_v32  ;;  %v971_v31 = vld [vmem:[#allocation9 + $0xb20] sm:$0xff]  ;;  %v2213_v32 = vpack.c.bf16 %v972_v20, %v968_v19  ;;  %v1004_v19 = vld [vmem:[#allocation9 + $0xc28] sm:$0xff]  ;;  %v746_v20 = vld [vmem:[#allocation9 + $0x418] sm:$0xff] }
 0x222   :  { %2198 = vmatprep.subr.bf16.mxu0 %v2197_v35  ;;  %2326 = vmatprep.subr.bf16.mxu1 %v2325_v36  ;;  %v717_v35 = vld [vmem:[#allocation9 + $0x330] sm:$0xff]  ;;  %v976_v36 = vld [vmem:[#allocation9 + $0xb48] sm:$0xff]  ;;  %v2215_v41 = vpack.c.bf16 %v971_v31, %v967_v30  ;;  %v2229_v30 = vpack.c.bf16 %v1004_v19, %v1000_v17  ;;  %v2357_v31 = vpack.c.bf16 %v750_v21, %v746_v20  ;;  %v782_v17 = vld [vmem:[#allocation9 + $0x538] sm:$0xff] }
 0x223   :  { %v2343_v42 = vpack.c.bf16 %v717_v35, %v713_v34  ;;  %v295_v34 = vrot.slane %v3104_v26, %v294_v18  ;;  %v745_v35 = vld [vmem:[#allocation9 + $0x410] sm:$0xff]  ;;  %v1031_v21 = vld [vmem:[#allocation9 + $0xd00] sm:$0xff] }
 0x225   :  { %2200 = vmatpush1.bf16.msra.mxu0 %v2199_v44  ;;  %2328 = vmatpush1.bf16.msra.mxu1 %v2327_v40  ;;  %v979_v44 = vld [vmem:[#allocation9 + $0xb60] sm:$0xff]  ;;  %v2217_v40 = vpack.c.bf16 %v980_v37, %v976_v36  ;;  %v749_v36 = vld [vmem:[#allocation9 + $0x430] sm:$0xff]  ;;  %v1008_v37 = vld [vmem:[#allocation9 + $0xc48] sm:$0xff] }
 0x226   :  { %2202 = vmatprep.subr.bf16.mxu0 %v2201_v47  ;;  %2330 = vmatprep.subr.bf16.mxu1 %v2329_v49  ;;  %v725_v47 = vld [vmem:[#allocation9 + $0x370] sm:$0xff]  ;;  %v984_v49 = vld [vmem:[#allocation9 + $0xb88] sm:$0xff]  ;;  %v2219_v56 = vpack.c.bf16 %v979_v44, %v975_v43  ;;  %v2359_v44 = vpack.c.bf16 %v749_v36, %v745_v35 }
 0x227   :  { %v2347_v57 = vpack.c.bf16 %v725_v47, %v721_v46  ;;  %v753_v46 = vld [vmem:[#allocation9 + $0x450] sm:$0xff]  ;;  %v2233_v47 = vpack.c.bf16 %v1012_v38, %v1008_v37  ;;  %v1039_v38 = vld [vmem:[#allocation9 + $0xd40] sm:$0xff] }
 0x229   :  { %2204 = vmatpush1.bf16.msra.mxu0 %v2203_v59  ;;  %2332 = vmatpush1.bf16.msra.mxu1 %v2331_v62  ;;  %v987_v59 = vld [vmem:[#allocation9 + $0xba0] sm:$0xff]  ;;  %v2221_v62 = vpack.c.bf16 %v988_v50, %v984_v49  ;;  %v757_v50 = vld [vmem:[#allocation9 + $0x470] sm:$0xff] }
 0x22a   :  { %2206 = vmatprep.subr.bf16.mxu0 %v2205_v1  ;;  %2334 = vmatprep.subr.bf16.mxu1 %v2333_v2  ;;  %v733_v1 = vld [vmem:[#allocation9 + $0x3b0] sm:$0xff]  ;;  %v992_v2 = vld [vmem:[#allocation9 + $0xbc8] sm:$0xff]  ;;  %v2223_v8 = vpack.c.bf16 %v987_v59, %v983_v58  ;;  %v2237_v58 = vpack.c.bf16 %v1020_v53, %v1016_v52  ;;  %v1015_v59 = vld [vmem:[#allocation9 + $0xc80] sm:$0xff] }
 0x22b   :  { %v2351_v9 = vpack.c.bf16 %v733_v1, %v729_v0  ;;  %v2225_v13 = vpack.c.bf16 %v996_v5, %v992_v2  ;;  %v765_v1 = vld [vmem:[#allocation9 + $0x4b0] sm:$0xff]  ;;  %v1024_v2 = vld [vmem:[#allocation9 + $0xcc8] sm:$0xff]  ;;  %v770_v5 = vld [vmem:[#allocation9 + $0x4d8] sm:$0xff] }
 0x22c   :  { %v1047_v53 = vld [vmem:[#allocation9 + $0xd80] sm:$0xff] }
 0x22d   :  { %2208 = vmatpush1.bf16.msra.mxu0 %v2207_v11  ;;  %2336 = vmatpush1.bf16.msra.mxu1 %v2335_v12  ;;  %v995_v11 = vld [vmem:[#allocation9 + $0xbe0] sm:$0xff]  ;;  %v282_v12 = vsub.s32 4, %v3087_v51 }
 0x22e   :  { %2210 = vmatprep.subr.bf16.mxu0 %v2209_v15  ;;  %2338 = vmatprep.subr.bf16.mxu1 %v2337_v16  ;;  %v737_v15 = vld [vmem:[#allocation9 + $0x3d0] sm:$0xff]  ;;  %v2227_v22 = vpack.c.bf16 %v995_v11, %v991_v10  ;;  %v1027_v10 = vld [vmem:[#allocation9 + $0xce0] sm:$0xff] }
 0x22f   :  { %v741_v16 = vld [vmem:[#allocation9 + $0x3f0] sm:$0xff] }
 0x230   :  { %v769_v11 = vld [vmem:[#allocation9 + $0x4d0] sm:$0xff] }
 0x231   :  { %2212 = vmatpush1.bf16.msra.mxu0 %v2211_v23  ;;  %2340 = vmatpush1.bf16.msra.mxu1 %v2339_v29  ;;  %v2355_v23 = vpack.c.bf16 %v741_v16, %v737_v15  ;;  %v283_v29 = vrot.slane %v3104_v26, %v282_v12  ;;  %v3148_v26 = vadd.f32 %v3133_v3, %v295_v34  ;;  %v1036_v15 = vld [vmem:[#allocation9 + $0xd28] sm:$0xff]  ;;  %v778_v16 = vld [vmem:[#allocation9 + $0x518] sm:$0xff] }
 0x232   :  { %2214 = vmatprep.subr.bf16.mxu0 %v2213_v32  ;;  %2342 = vmatprep.subr.bf16.mxu1 %v2341_v33  ;;  %v999_v32 = vld [vmem:[#allocation9 + $0xc00] sm:$0xff]  ;;  %v2363_v3 = vpack.c.bf16 %v757_v50, %v753_v46  ;;  %v2369_v12 = vpack.c.bf16 %v774_v6, %v770_v5  ;;  %v790_v34 = vld [vmem:[#allocation9 + $0x578] sm:$0xff]  ;;  %v801_v6 = vld [vmem:[#allocation9 + $0x5d0] sm:$0xff] }
 0x233   :  { %v1003_v33 = vld [vmem:[#allocation9 + $0xc20] sm:$0xff]  ;;  %v3145_v43 = vadd.f32 %v3128_v60, %v283_v29  ;;  %v762_v60 = vld [vmem:[#allocation9 + $0x498] sm:$0xff]  ;;  %v2373_v29 = vpack.c.bf16 %v782_v17, %v778_v16  ;;  %v809_v17 = vld [vmem:[#allocation9 + $0x610] sm:$0xff] }
 0x234   :  { %v794_v46 = vld [vmem:[#allocation9 + $0x598] sm:$0xff]  ;;  %v1059_v5 = vld [vmem:[#allocation9 + $0xde0] sm:$0xff] }
 0x235   :  { %2216 = vmatpush1.bf16.msra.mxu0 %v2215_v41  ;;  %2344 = vmatpush1.bf16.msra.mxu1 %v2343_v42  ;;  %v758_v41 = vld [vmem:[#allocation9 + $0x478] sm:$0xff]  ;;  %v2231_v42 = vpack.c.bf16 %v1003_v33, %v999_v32  ;;  %v1044_v32 = vld [vmem:[#allocation9 + $0xd68] sm:$0xff]  ;;  %v1067_v16 = vld [vmem:[#allocation9 + $0xe20] sm:$0xff] }
 0x236   :  { %2218 = vmatprep.subr.bf16.mxu0 %v2217_v40  ;;  %2346 = vmatprep.subr.bf16.mxu1 %v2345_v45  ;;  %v1007_v40 = vld [vmem:[#allocation9 + $0xc40] sm:$0xff]  ;;  %v2361_v49 = vpack.c.bf16 %v758_v41, %v754_v39  ;;  %v786_v33 = vld [vmem:[#allocation9 + $0x558] sm:$0xff]  ;;  %v785_v41 = vld [vmem:[#allocation9 + $0x550] sm:$0xff] }
 0x237   :  { %v1011_v45 = vld [vmem:[#allocation9 + $0xc60] sm:$0xff] }
 0x238   :  { %v1043_v39 = vld [vmem:[#allocation9 + $0xd60] sm:$0xff] }
 0x239   :  { %2220 = vmatpush1.bf16.msra.mxu0 %v2219_v56  ;;  %2348 = vmatpush1.bf16.msra.mxu1 %v2347_v57  ;;  %v766_v56 = vld [vmem:[#allocation9 + $0x4b8] sm:$0xff]  ;;  %v2235_v57 = vpack.c.bf16 %v1011_v45, %v1007_v40  ;;  %v1048_v40 = vld [vmem:[#allocation9 + $0xd88] sm:$0xff] }
 0x23a   :  { %2222 = vmatprep.subr.bf16.mxu0 %v2221_v62  ;;  %2350 = vmatprep.subr.bf16.mxu1 %v2349_v63  ;;  %v1019_v62 = vld [vmem:[#allocation9 + $0xca0] sm:$0xff]  ;;  %v761_v63 = vld [vmem:[#allocation9 + $0x490] sm:$0xff]  ;;  %v2365_v0 = vpack.c.bf16 %v766_v56, %v762_v60  ;;  %v1052_v45 = vld [vmem:[#allocation9 + $0xda8] sm:$0xff] }
 0x23b   :  { %v2239_v7 = vpack.c.bf16 %v1019_v62, %v1015_v59  ;;  %v2253_v52 = vpack.c.bf16 %v1052_v45, %v1048_v40  ;;  %v1051_v60 = vld [vmem:[#allocation9 + $0xda0] sm:$0xff]  ;;  %v793_v56 = vld [vmem:[#allocation9 + $0x590] sm:$0xff]  ;;  %v1060_v59 = vld [vmem:[#allocation9 + $0xde8] sm:$0xff] }
 0x23c   :  { %v802_v62 = vld [vmem:[#allocation9 + $0x5d8] sm:$0xff]  ;;  %v1079_v45 = vld [vmem:[#allocation9 + $0xe80] sm:$0xff] }
 0x23d   :  { %2224 = vmatpush1.bf16.msra.mxu0 %v2223_v8  ;;  %2352 = vmatpush1.bf16.msra.mxu1 %v2351_v9  ;;  %v2367_v8 = vpack.c.bf16 %v765_v1, %v761_v63  ;;  %v806_v63 = vld [vmem:[#allocation9 + $0x5f8] sm:$0xff] }
 0x23e   :  { %2226 = vmatprep.subr.bf16.mxu0 %v2225_v13  ;;  %2354 = vmatprep.subr.bf16.mxu1 %v2353_v14  ;;  %v773_v13 = vld [vmem:[#allocation9 + $0x4f0] sm:$0xff]  ;;  %v1032_v14 = vld [vmem:[#allocation9 + $0xd08] sm:$0xff] }
 0x23f   :  { %v2371_v19 = vpack.c.bf16 %v773_v13, %v769_v11  ;;  %v2245_v20 = vpack.c.bf16 %v1036_v15, %v1032_v14  ;;  %v814_v11 = vld [vmem:[#allocation9 + $0x638] sm:$0xff]  ;;  %v1063_v15 = vld [vmem:[#allocation9 + $0xe00] sm:$0xff] }
 0x241   :  { %2228 = vmatpush1.bf16.msra.mxu0 %v2227_v22  ;;  %2356 = vmatpush1.bf16.msra.mxu1 %v2355_v23  ;;  %v1035_v22 = vld [vmem:[#allocation9 + $0xd20] sm:$0xff]  ;;  %v777_v23 = vld [vmem:[#allocation9 + $0x510] sm:$0xff] }
 0x242   :  { %2230 = vmatprep.subr.bf16.mxu0 %v2229_v30  ;;  %2358 = vmatprep.subr.bf16.mxu1 %v2357_v31  ;;  %v781_v30 = vld [vmem:[#allocation9 + $0x530] sm:$0xff]  ;;  %v1040_v31 = vld [vmem:[#allocation9 + $0xd48] sm:$0xff]  ;;  %v2247_v35 = vpack.c.bf16 %v1035_v22, %v1031_v21  ;;  %v818_v22 = vld [vmem:[#allocation9 + $0x658] sm:$0xff] }
 0x243   :  { %v2375_v36 = vpack.c.bf16 %v781_v30, %v777_v23  ;;  %v2249_v37 = vpack.c.bf16 %v1044_v32, %v1040_v31  ;;  %v1076_v21 = vld [vmem:[#allocation9 + $0xe68] sm:$0xff]  ;;  %v822_v23 = vld [vmem:[#allocation9 + $0x678] sm:$0xff]  ;;  %v1071_v32 = vld [vmem:[#allocation9 + $0xe40] sm:$0xff] }
 0x244   :  { %1356 = vmatmul.mubr.f32.vlgmr.msra.gmra.mrb[4].mxu0 %v3145_v43  ;;  %1498 = vmatmul.mubr.f32.vlgmr.msra.gmra.mrb[6].mxu1 %v3124_v54  ;;  %v1028_v54 = vld [vmem:[#allocation9 + $0xce8] sm:$0xff] }
 0x245   :  { %2232 = vmatpush1.bf16.msra.mxu0 %v2231_v42  ;;  %1426 = vmatprep.mubr.f32.mxu0 %v3148_v26  ;;  %v2241_v9 = vpack.c.bf16 %v1028_v54, %v1024_v2  ;;  %v2377_v42 = vpack.c.bf16 %v790_v34, %v786_v33  ;;  %v1055_v54 = vld [vmem:[#allocation9 + $0xdc0] sm:$0xff]  ;;  %v817_v34 = vld [vmem:[#allocation9 + $0x650] sm:$0xff] }
 0x246   :  { %2360 = vmatpush1.bf16.msra.mxu1 %v2359_v44  ;;  %1568 = vmatprep.mubr.f32.mxu1 %v3121_v48  ;;  %v1023_v48 = vld [vmem:[#allocation9 + $0xcc0] sm:$0xff]  ;;  %v789_v44 = vld [vmem:[#allocation9 + $0x570] sm:$0xff] }
 0x247   :  { %2234 = vmatprep.subr.bf16.mxu0 %v2233_v47  ;;  %2362 = vmatprep.subr.bf16.mxu1 %v2361_v49  ;;  %v2243_v18 = vpack.c.bf16 %v1027_v10, %v1023_v48  ;;  %v798_v47 = vld [vmem:[#allocation9 + $0x5b8] sm:$0xff]  ;;  %v2251_v49 = vpack.c.bf16 %v1043_v39, %v1039_v38  ;;  %v2379_v50 = vpack.c.bf16 %v789_v44, %v785_v41  ;;  %v1068_v48 = vld [vmem:[#allocation9 + $0xe28] sm:$0xff]  ;;  %v1075_v33 = vld [vmem:[#allocation9 + $0xe60] sm:$0xff] }
 0x248   :  { %v810_v10 = vld [vmem:[#allocation9 + $0x618] sm:$0xff]  ;;  %v1084_v38 = vld [vmem:[#allocation9 + $0xea8] sm:$0xff] }
 0x249   :  { %2236 = vmatpush1.bf16.msra.mxu0 %v2235_v57  ;;  %v2381_v57 = vpack.c.bf16 %v798_v47, %v794_v46  ;;  %v826_v39 = vld [vmem:[#allocation9 + $0x698] sm:$0xff]  ;;  %v1083_v46 = vld [vmem:[#allocation9 + $0xea0] sm:$0xff]  ;;  %v825_v47 = vld [vmem:[#allocation9 + $0x690] sm:$0xff] }
 0x24a   :  { %2364 = vmatpush1.bf16.msra.mxu1 %v2363_v3  ;;  %2238 = vmatprep.subr.bf16.mxu0 %v2237_v58  ;;  %v797_v3 = vld [vmem:[#allocation9 + $0x5b0] sm:$0xff]  ;;  %v1056_v58 = vld [vmem:[#allocation9 + $0xdc8] sm:$0xff]  ;;  %v830_v41 = vld [vmem:[#allocation9 + $0x6b8] sm:$0xff] }
 0x24b   :  { %2366 = vmatprep.subr.bf16.mxu1 %v2365_v0  ;;  %v2255_v0 = vpack.c.bf16 %v1051_v60, %v1047_v53  ;;  %v2383_v1 = vpack.c.bf16 %v797_v3, %v793_v56  ;;  %v2257_v2 = vpack.c.bf16 %v1060_v59, %v1056_v58  ;;  %v1092_v53 = vld [vmem:[#allocation9 + $0xee8] sm:$0xff]  ;;  %v834_v60 = vld [vmem:[#allocation9 + $0x6d8] sm:$0xff]  ;;  %v1087_v59 = vld [vmem:[#allocation9 + $0xec0] sm:$0xff] }
 0x24c   :  { %v838_v56 = vld [vmem:[#allocation9 + $0x6f8] sm:$0xff] }
 0x24d   :  { %2240 = vmatpush1.bf16.msra.mxu0 %v2239_v7  ;;  %v2385_v7 = vpack.c.bf16 %v806_v63, %v802_v62  ;;  %v1091_v62 = vld [vmem:[#allocation9 + $0xee0] sm:$0xff]  ;;  %v833_v63 = vld [vmem:[#allocation9 + $0x6d0] sm:$0xff] }
 0x24e   :  { %2368 = vmatpush1.bf16.msra.mxu1 %v2367_v8  ;;  %2242 = vmatprep.subr.bf16.mxu0 %v2241_v9  ;;  %v805_v8 = vld [vmem:[#allocation9 + $0x5f0] sm:$0xff]  ;;  %v1064_v9 = vld [vmem:[#allocation9 + $0xe08] sm:$0xff] }
 0x24f   :  { %2370 = vmatprep.subr.bf16.mxu1 %v2369_v12  ;;  %v2259_v12 = vpack.c.bf16 %v1059_v5, %v1055_v54  ;;  %v2387_v13 = vpack.c.bf16 %v805_v8, %v801_v6  ;;  %v2261_v14 = vpack.c.bf16 %v1068_v48, %v1064_v9  ;;  %v1100_v54 = vld [vmem:[#allocation9 + $0xf28] sm:$0xff]  ;;  %v842_v5 = vld [vmem:[#allocation9 + $0x718] sm:$0xff]  ;;  %v1095_v48 = vld [vmem:[#allocation9 + $0xf00] sm:$0xff] }
 0x250   :  { %v846_v6 = vld [vmem:[#allocation9 + $0x738] sm:$0xff] }
 0x251   :  { %2244 = vmatpush1.bf16.msra.mxu0 %v2243_v18  ;;  %v2389_v18 = vpack.c.bf16 %v814_v11, %v810_v10  ;;  %v1099_v10 = vld [vmem:[#allocation9 + $0xf20] sm:$0xff]  ;;  %v841_v11 = vld [vmem:[#allocation9 + $0x710] sm:$0xff] }
 0x252   :  { %2372 = vmatpush1.bf16.msra.mxu1 %v2371_v19  ;;  %2246 = vmatprep.subr.bf16.mxu0 %v2245_v20  ;;  %v813_v19 = vld [vmem:[#allocation9 + $0x630] sm:$0xff]  ;;  %v1072_v20 = vld [vmem:[#allocation9 + $0xe48] sm:$0xff] }
 0x253   :  { %2374 = vmatprep.subr.bf16.mxu1 %v2373_v29  ;;  %v2263_v29 = vpack.c.bf16 %v1067_v16, %v1063_v15  ;;  %v2391_v30 = vpack.c.bf16 %v813_v19, %v809_v17  ;;  %v2265_v31 = vpack.c.bf16 %v1076_v21, %v1072_v20  ;;  %v1108_v15 = vld [vmem:[#allocation9 + $0xf68] sm:$0xff]  ;;  %v850_v16 = vld [vmem:[#allocation9 + $0x758] sm:$0xff]  ;;  %v1103_v21 = vld [vmem:[#allocation9 + $0xf40] sm:$0xff] }
 0x254   :  { %v854_v17 = vld [vmem:[#allocation9 + $0x778] sm:$0xff] }
 0x255   :  { %2248 = vmatpush1.bf16.msra.mxu0 %v2247_v35  ;;  %v2393_v35 = vpack.c.bf16 %v822_v23, %v818_v22  ;;  %v1107_v22 = vld [vmem:[#allocation9 + $0xf60] sm:$0xff]  ;;  %v849_v23 = vld [vmem:[#allocation9 + $0x750] sm:$0xff] }
 0x256   :  { %2376 = vmatpush1.bf16.msra.mxu1 %v2375_v36  ;;  %2250 = vmatprep.subr.bf16.mxu0 %v2249_v37  ;;  %v821_v36 = vld [vmem:[#allocation9 + $0x670] sm:$0xff]  ;;  %v1080_v37 = vld [vmem:[#allocation9 + $0xe88] sm:$0xff] }
 0x257   :  { %2378 = vmatprep.subr.bf16.mxu1 %v2377_v42  ;;  %v2267_v42 = vpack.c.bf16 %v1075_v33, %v1071_v32  ;;  %v2395_v44 = vpack.c.bf16 %v821_v36, %v817_v34  ;;  %v2269_v40 = vpack.c.bf16 %v1084_v38, %v1080_v37  ;;  %v1116_v32 = vld [vmem:[#allocation9 + $0xfa8] sm:$0xff]  ;;  %v858_v33 = vld [vmem:[#allocation9 + $0x798] sm:$0xff]  ;;  %v1111_v38 = vld [vmem:[#allocation9 + $0xf80] sm:$0xff] }
 0x258   :  { %v862_v34 = vld [vmem:[#allocation9 + $0x7b8] sm:$0xff] }
 0x259   :  { %2252 = vmatpush1.bf16.msra.mxu0 %v2251_v49  ;;  %v2397_v49 = vpack.c.bf16 %v830_v41, %v826_v39  ;;  %v1115_v39 = vld [vmem:[#allocation9 + $0xfa0] sm:$0xff]  ;;  %v857_v41 = vld [vmem:[#allocation9 + $0x790] sm:$0xff] }
 0x25a   :  { %2380 = vmatpush1.bf16.msra.mxu1 %v2379_v50  ;;  %2254 = vmatprep.subr.bf16.mxu0 %v2253_v52  ;;  %v829_v50 = vld [vmem:[#allocation9 + $0x6b0] sm:$0xff]  ;;  %v1088_v52 = vld [vmem:[#allocation9 + $0xec8] sm:$0xff] }
 0x25b   :  { %2382 = vmatprep.subr.bf16.mxu1 %v2381_v57  ;;  %v2271_v57 = vpack.c.bf16 %v1083_v46, %v1079_v45  ;;  %v2399_v3 = vpack.c.bf16 %v829_v50, %v825_v47  ;;  %v2273_v58 = vpack.c.bf16 %v1092_v53, %v1088_v52  ;;  %v1124_v45 = vld [vmem:[#allocation9 + $0xfe8] sm:$0xff]  ;;  %v866_v46 = vld [vmem:[#allocation9 + $0x7d8] sm:$0xff]  ;;  %v290_v50 = vsub.s32 6, %v3087_v51 }
 0x25c   :  { %v870_v47 = vld [vmem:[#allocation9 + $0x7f8] sm:$0xff] }
 0x25d   :  { %2256 = vmatpush1.bf16.msra.mxu0 %v2255_v0  ;;  %v2401_v0 = vpack.c.bf16 %v838_v56, %v834_v60  ;;  %v1119_v60 = vld [vmem:[#allocation9 + $0xfc0] sm:$0xff] }
 0x25e   :  { %2384 = vmatpush1.bf16.msra.mxu1 %v2383_v1  ;;  %2258 = vmatprep.subr.bf16.mxu0 %v2257_v2  ;;  %v837_v1 = vld [vmem:[#allocation9 + $0x6f0] sm:$0xff]  ;;  %v1096_v2 = vld [vmem:[#allocation9 + $0xf08] sm:$0xff]  ;;  %v1123_v56 = vld [vmem:[#allocation9 + $0xfe0] sm:$0xff] }
 0x25f   :  { %2386 = vmatprep.subr.bf16.mxu1 %v2385_v7  ;;  %v2275_v7 = vpack.c.bf16 %v1091_v62, %v1087_v59  ;;  %v2403_v8 = vpack.c.bf16 %v837_v1, %v833_v63  ;;  %v2277_v9 = vpack.c.bf16 %v1100_v54, %v1096_v2  ;;  %v874_v59 = vld [vmem:[#allocation9 + $0x818] sm:$0xff]  ;;  %v2291_v63 = vpack.c.bf16 %v1123_v56, %v1119_v60  ;;  %v1733_v56 = vld [vmem:[#allocation12 + $0x60] sm:$0xff] }
 0x260   :  { %v878_v62 = vld [vmem:[#allocation9 + $0x838] sm:$0xff] }
 0x261   :  { %2260 = vmatpush1.bf16.msra.mxu0 %v2259_v12  ;;  %v2405_v12 = vpack.c.bf16 %v846_v6, %v842_v5  ;;  %v2421_v54 = vpack.c.bf16 %v878_v62, %v874_v59  ;;  %v873_v5 = vld [vmem:[#allocation9 + $0x810] sm:$0xff]  ;;  %v1740_v62 = vld [vmem:[#allocation12 + $0x98] sm:$0xff] }
 0x262   :  { %2388 = vmatpush1.bf16.msra.mxu1 %v2387_v13  ;;  %2262 = vmatprep.subr.bf16.mxu0 %v2261_v14  ;;  %v845_v13 = vld [vmem:[#allocation9 + $0x730] sm:$0xff]  ;;  %v1104_v14 = vld [vmem:[#allocation9 + $0xf48] sm:$0xff] }
 0x263   :  { %2390 = vmatprep.subr.bf16.mxu1 %v2389_v18  ;;  %v2279_v18 = vpack.c.bf16 %v1099_v10, %v1095_v48  ;;  %v2407_v19 = vpack.c.bf16 %v845_v13, %v841_v11  ;;  %v2281_v20 = vpack.c.bf16 %v1108_v15, %v1104_v14  ;;  %v877_v6 = vld [vmem:[#allocation9 + $0x830] sm:$0xff]  ;;  %v890_v13 = vld [vmem:[#allocation9 + $0x898] sm:$0xff] }
 0x264   :  { %v2423_v48 = vpack.c.bf16 %v877_v6, %v873_v5  ;;  %v881_v11 = vld [vmem:[#allocation9 + $0x850] sm:$0xff]  ;;  %v894_v14 = vld [vmem:[#allocation9 + $0x8b8] sm:$0xff]  ;;  %v1737_v6 = vld [vmem:[#allocation12 + $0x80] sm:$0xff] }
 0x265   :  { %2264 = vmatpush1.bf16.msra.mxu0 %v2263_v29  ;;  %v2409_v29 = vpack.c.bf16 %v854_v17, %v850_v16  ;;  %v889_v15 = vld [vmem:[#allocation9 + $0x890] sm:$0xff] }
 0x266   :  { %2392 = vmatpush1.bf16.msra.mxu1 %v2391_v30  ;;  %2266 = vmatprep.subr.bf16.mxu0 %v2265_v31  ;;  %v853_v30 = vld [vmem:[#allocation9 + $0x770] sm:$0xff]  ;;  %v1112_v31 = vld [vmem:[#allocation9 + $0xf88] sm:$0xff] }
 0x267   :  { %2394 = vmatprep.subr.bf16.mxu1 %v2393_v35  ;;  %v2283_v35 = vpack.c.bf16 %v1107_v22, %v1103_v21  ;;  %v2411_v36 = vpack.c.bf16 %v853_v30, %v849_v23  ;;  %v2285_v37 = vpack.c.bf16 %v1116_v32, %v1112_v31  ;;  %v893_v16 = vld [vmem:[#allocation9 + $0x8b0] sm:$0xff]  ;;  %v1728_v23 = vld [vmem:[#allocation12 + $0x38] sm:$0xff]  ;;  %v1725_v32 = vld [vmem:[#allocation12 + $0x20] sm:$0xff] }
 0x268   :  { %v1722_v17 = vld [vmem:[#allocation12 + $0x8] sm:$0xff]  ;;  %v1723_v21 = vld [vmem:[#allocation12 + $0x10] sm:$0xff] }
 0x269   :  { %2268 = vmatpush1.bf16.msra.mxu0 %v2267_v42  ;;  %v2413_v42 = vpack.c.bf16 %v862_v34, %v858_v33  ;;  %v1726_v22 = vld [vmem:[#allocation12 + $0x28] sm:$0xff]  ;;  %v1727_v33 = vld [vmem:[#allocation12 + $0x30] sm:$0xff] }
 0x26a   :  { %2396 = vmatpush1.bf16.msra.mxu1 %v2395_v44  ;;  %2270 = vmatprep.subr.bf16.mxu0 %v2269_v40  ;;  %v861_v44 = vld [vmem:[#allocation9 + $0x7b0] sm:$0xff]  ;;  %v1120_v40 = vld [vmem:[#allocation9 + $0xfc8] sm:$0xff]  ;;  %v2553_v31 = vpack.c.bf16 %v1728_v23, %v1726_v22  ;;  %v898_v34 = vld [vmem:[#allocation9 + $0x8d8] sm:$0xff] }
 0x26b   :  { %2398 = vmatprep.subr.bf16.mxu1 %v2397_v49  ;;  %v2287_v49 = vpack.c.bf16 %v1115_v39, %v1111_v38  ;;  %v2415_v52 = vpack.c.bf16 %v861_v44, %v857_v41  ;;  %v2289_v53 = vpack.c.bf16 %v1124_v45, %v1120_v40  ;;  %v897_v38 = vld [vmem:[#allocation9 + $0x8d0] sm:$0xff]  ;;  %v1729_v41 = vld [vmem:[#allocation12 + $0x40] sm:$0xff]  ;;  %v1748_v22 = vld [vmem:[#allocation12 + $0xd8] sm:$0xff] }
 0x26c   :  { %v901_v40 = vld [vmem:[#allocation9 + $0x8f0] sm:$0xff]  ;;  %v930_v23 = vld [vmem:[#allocation9 + $0x9d8] sm:$0xff] }
 0x26d   :  { %2272 = vmatpush1.bf16.msra.mxu0 %v2271_v57  ;;  %v2417_v57 = vpack.c.bf16 %v870_v47, %v866_v46  ;;  %v1734_v45 = vld [vmem:[#allocation12 + $0x68] sm:$0xff]  ;;  %v1736_v46 = vld [vmem:[#allocation12 + $0x78] sm:$0xff] }
 0x26e   :  { %2400 = vmatpush1.bf16.msra.mxu1 %v2399_v3  ;;  %2274 = vmatprep.subr.bf16.mxu0 %v2273_v58  ;;  %v865_v3 = vld [vmem:[#allocation9 + $0x7d0] sm:$0xff]  ;;  %v906_v47 = vld [vmem:[#allocation9 + $0x918] sm:$0xff]  ;;  %v2561_v60 = vpack.c.bf16 %v1736_v46, %v1734_v45  ;;  %v1749_v45 = vld [vmem:[#allocation12 + $0xe0] sm:$0xff] }
 0x26f   :  { %2402 = vmatprep.subr.bf16.mxu1 %v2401_v0  ;;  %v869_v58 = vld [vmem:[#allocation9 + $0x7f0] sm:$0xff]  ;;  %v2724_v0 = vld [vmem:[#allocation8] sm:$0xff] }
 0x270   :  { %v291_v1 = vrot.slane %v2724_v0, %v290_v50  ;;  %v2419_v2 = vpack.c.bf16 %v869_v58, %v865_v3  ;;  %v909_v58 = vld [vmem:[#allocation9 + $0x930] sm:$0xff]  ;;  %v918_v0 = vld [vmem:[#allocation9 + $0x978] sm:$0xff] }
 0x271   :  { %2276 = vmatpush1.bf16.msra.mxu0 %v2275_v7  ;;  %v882_v7 = vld [vmem:[#allocation9 + $0x858] sm:$0xff]  ;;  %v1738_v59 = vld [vmem:[#allocation12 + $0x88] sm:$0xff] }
 0x272   :  { %2404 = vmatpush1.bf16.msra.mxu1 %v2403_v8  ;;  %2278 = vmatprep.subr.bf16.mxu0 %v2277_v9  ;;  %v886_v8 = vld [vmem:[#allocation9 + $0x878] sm:$0xff]  ;;  %v3156_v9 = vadd.f32 %v3130_v61, %v291_v1  ;;  %v2565_v5 = vpack.c.bf16 %v1740_v62, %v1738_v59  ;;  %v1753_v59 = vld [vmem:[#allocation12 + $0x100] sm:$0xff] }
 0x273   :  { %2406 = vmatprep.subr.bf16.mxu1 %v2405_v12  ;;  %v2425_v10 = vpack.c.bf16 %v886_v8, %v882_v7  ;;  %v885_v12 = vld [vmem:[#allocation9 + $0x870] sm:$0xff] }
 0x274   :  { %v2427_v61 = vpack.c.bf16 %v885_v12, %v881_v11  ;;  %v1739_v7 = vld [vmem:[#allocation12 + $0x90] sm:$0xff]  ;;  %v1744_v11 = vld [vmem:[#allocation12 + $0xb8] sm:$0xff] }
 0x275   :  { %2280 = vmatpush1.bf16.msra.mxu0 %v2279_v18  ;;  %v1724_v18 = vld [vmem:[#allocation12 + $0x18] sm:$0xff]  ;;  %v1751_v46 = vld [vmem:[#allocation12 + $0xf0] sm:$0xff] }
 0x276   :  { %2408 = vmatpush1.bf16.msra.mxu1 %v2407_v19  ;;  %2282 = vmatprep.subr.bf16.mxu0 %v2281_v20  ;;  %v1721_v19 = vld [vmem:[#allocation12] sm:$0xff]  ;;  %v2549_v20 = vpack.c.bf16 %v1724_v18, %v1722_v17  ;;  %v922_v12 = vld [vmem:[#allocation9 + $0x998] sm:$0xff] }
 0x277   :  { %2410 = vmatprep.subr.bf16.mxu1 %v2409_v29  ;;  %v2429_v29 = vpack.c.bf16 %v894_v14, %v890_v13  ;;  %v2551_v30 = vpack.c.bf16 %v1723_v21, %v1721_v19  ;;  %v926_v13 = vld [vmem:[#allocation9 + $0x9b8] sm:$0xff]  ;;  %v2567_v14 = vpack.c.bf16 %v1739_v7, %v1737_v6  ;;  %v1741_v18 = vld [vmem:[#allocation12 + $0xa0] sm:$0xff]  ;;  %v1746_v21 = vld [vmem:[#allocation12 + $0xc8] sm:$0xff] }
 0x278   :  { %v1743_v19 = vld [vmem:[#allocation12 + $0xb0] sm:$0xff] }
 0x279   :  { %2284 = vmatpush1.bf16.msra.mxu0 %v2283_v35  ;;  %v902_v35 = vld [vmem:[#allocation9 + $0x8f8] sm:$0xff] }
 0x27a   :  { %2412 = vmatpush1.bf16.msra.mxu1 %v2411_v36  ;;  %2286 = vmatprep.subr.bf16.mxu0 %v2285_v37  ;;  %v1732_v36 = vld [vmem:[#allocation12 + $0x58] sm:$0xff]  ;;  %v2555_v37 = vpack.c.bf16 %v1727_v33, %v1725_v32  ;;  %v2433_v44 = vpack.c.bf16 %v902_v35, %v898_v34  ;;  %v929_v32 = vld [vmem:[#allocation9 + $0x9d0] sm:$0xff]  ;;  %v2573_v33 = vpack.c.bf16 %v1748_v22, %v1746_v21  ;;  %v1761_v21 = vld [vmem:[#allocation12 + $0x140] sm:$0xff] }
 0x27b   :  { %2414 = vmatprep.subr.bf16.mxu1 %v2413_v42  ;;  %v1731_v42 = vld [vmem:[#allocation12 + $0x50] sm:$0xff] }
 0x27c   :  { %v2559_v50 = vpack.c.bf16 %v1731_v42, %v1729_v41  ;;  %v1747_v34 = vld [vmem:[#allocation12 + $0xd0] sm:$0xff] }
 0x27d   :  { %2288 = vmatpush1.bf16.msra.mxu0 %v2287_v49  ;;  %v910_v49 = vld [vmem:[#allocation9 + $0x938] sm:$0xff] }
 0x27e   :  { %2416 = vmatpush1.bf16.msra.mxu1 %v2415_v52  ;;  %2290 = vmatprep.subr.bf16.mxu0 %v2289_v53  ;;  %v2435_v52 = vpack.c.bf16 %v901_v40, %v897_v38  ;;  %v905_v53 = vld [vmem:[#allocation9 + $0x910] sm:$0xff]  ;;  %v2437_v3 = vpack.c.bf16 %v910_v49, %v906_v47  ;;  %v938_v38 = vld [vmem:[#allocation9 + $0xa18] sm:$0xff] }
 0x27f   :  { %2418 = vmatprep.subr.bf16.mxu1 %v2417_v57  ;;  %v1735_v57 = vld [vmem:[#allocation12 + $0x70] sm:$0xff] }
 0x280   :  { %v2563_v1 = vpack.c.bf16 %v1735_v57, %v1733_v56  ;;  %v941_v49 = vld [vmem:[#allocation9 + $0xa30] sm:$0xff]  ;;  %v2579_v56 = vpack.c.bf16 %v1751_v46, %v1749_v45 }
 0x281   :  { %2292 = vmatpush1.bf16.msra.mxu0 %v2291_v63  ;;  %v914_v63 = vld [vmem:[#allocation9 + $0x958] sm:$0xff] }
 0x282   :  { %2420 = vmatpush1.bf16.msra.mxu1 %v2419_v2  ;;  %2550 = vmatprep.subr.bf16.mxu0 %v2549_v20  ;;  %v2439_v2 = vpack.c.bf16 %v909_v58, %v905_v53  ;;  %v2441_v8 = vpack.c.bf16 %v918_v0, %v914_v63  ;;  %v925_v20 = vld [vmem:[#allocation9 + $0x9b0] sm:$0xff]  ;;  %v946_v53 = vld [vmem:[#allocation9 + $0xa58] sm:$0xff] }
 0x283   :  { %2422 = vmatprep.subr.bf16.mxu1 %v2421_v54  ;;  %v913_v54 = vld [vmem:[#allocation9 + $0x950] sm:$0xff] }
 0x284   :  { %1427 = vmatmul.mubr.f32.vlgmr.msra.gmra.mrb[4].mxu0 %v3156_v9  ;;  %v1755_v62 = vld [vmem:[#allocation12 + $0x110] sm:$0xff] }
 0x285   :  { %1569 = vmatmul.mubr.f32.vlgmr.msra.gmra.mrb[6].mxu1 %v3126_v55  ;;  %v1730_v55 = vld [vmem:[#allocation12 + $0x48] sm:$0xff]  ;;  %2552 = vmatpush1.bf16.msra.mxu0 %v2551_v30  ;;  %v2571_v30 = vpack.c.bf16 %v1743_v19, %v1741_v18  ;;  %v2583_v6 = vpack.c.bf16 %v1755_v62, %v1753_v59  ;;  %v1763_v22 = vld [vmem:[#allocation12 + $0x150] sm:$0xff] }
 0x286   :  { %2424 = vmatpush1.bf16.msra.mxu1 %v2423_v48  ;;  %1639 = vmatprep.mubr.f32.mxu1 %v3137_v4  ;;  %v2431_v4 = vpack.c.bf16 %v893_v16, %v889_v15  ;;  %v2557_v39 = vpack.c.bf16 %v1732_v36, %v1730_v55  ;;  %v917_v48 = vld [vmem:[#allocation9 + $0x970] sm:$0xff]  ;;  %v1745_v55 = vld [vmem:[#allocation12 + $0xc0] sm:$0xff] }
 0x287   :  { %2426 = vmatprep.subr.bf16.mxu1 %v2425_v10  ;;  %2554 = vmatprep.subr.bf16.mxu0 %v2553_v31  ;;  %v1742_v10 = vld [vmem:[#allocation12 + $0xa8] sm:$0xff]  ;;  %v2443_v15 = vpack.c.bf16 %v917_v48, %v913_v54  ;;  %v2575_v41 = vpack.c.bf16 %v1747_v34, %v1745_v55  ;;  %v954_v54 = vld [vmem:[#allocation9 + $0xa98] sm:$0xff]  ;;  %v2591_v55 = vpack.c.bf16 %v1763_v22, %v1761_v21 }
 0x288   :  { %v921_v16 = vld [vmem:[#allocation9 + $0x990] sm:$0xff]  ;;  %v2569_v17 = vpack.c.bf16 %v1744_v11, %v1742_v10  ;;  %v1757_v10 = vld [vmem:[#allocation12 + $0x120] sm:$0xff]  ;;  %v1010_v21 = vld [vmem:[#allocation9 + $0xc58] sm:$0xff] }
 0x289   :  { %2556 = vmatpush1.bf16.msra.mxu0 %v2555_v37  ;;  %v2447_v31 = vpack.c.bf16 %v925_v20, %v921_v16  ;;  %v933_v36 = vld [vmem:[#allocation9 + $0x9f0] sm:$0xff]  ;;  %v962_v16 = vld [vmem:[#allocation9 + $0xad8] sm:$0xff] }
 0x28a   :  { %2428 = vmatpush1.bf16.msra.mxu1 %v2427_v61  ;;  %2558 = vmatprep.subr.bf16.mxu0 %v2557_v39  ;;  %v2445_v61 = vpack.c.bf16 %v926_v13, %v922_v12  ;;  %v1750_v37 = vld [vmem:[#allocation12 + $0xe8] sm:$0xff]  ;;  %v942_v39 = vld [vmem:[#allocation9 + $0xa38] sm:$0xff]  ;;  %v2451_v42 = vpack.c.bf16 %v933_v36, %v929_v32 }
 0x28b   :  { %2430 = vmatprep.subr.bf16.mxu1 %v2429_v29  ;;  %v934_v29 = vld [vmem:[#allocation9 + $0x9f8] sm:$0xff]  ;;  %v2453_v47 = vpack.c.bf16 %v942_v39, %v938_v38  ;;  %v949_v0 = vld [vmem:[#allocation9 + $0xa70] sm:$0xff] }
 0x28c   :  { %v2449_v35 = vpack.c.bf16 %v934_v29, %v930_v23  ;;  %v1759_v11 = vld [vmem:[#allocation12 + $0x130] sm:$0xff] }
 0x28d   :  { %2560 = vmatpush1.bf16.msra.mxu0 %v2559_v50  ;;  %v1754_v50 = vld [vmem:[#allocation12 + $0x108] sm:$0xff]  ;;  %v2587_v18 = vpack.c.bf16 %v1759_v11, %v1757_v10  ;;  %v970_v32 = vld [vmem:[#allocation9 + $0xb18] sm:$0xff] }
 0x28e   :  { %2432 = vmatpush1.bf16.msra.mxu1 %v2431_v4  ;;  %2562 = vmatprep.subr.bf16.mxu0 %v2561_v60  ;;  %v1752_v4 = vld [vmem:[#allocation12 + $0xf8] sm:$0xff]  ;;  %v957_v13 = vld [vmem:[#allocation9 + $0xab0] sm:$0xff] }
 0x28f   :  { %2434 = vmatprep.subr.bf16.mxu1 %v2433_v44  ;;  %v937_v44 = vld [vmem:[#allocation9 + $0xa10] sm:$0xff]  ;;  %v2577_v40 = vpack.c.bf16 %v1752_v4, %v1750_v37  ;;  %v950_v60 = vld [vmem:[#allocation9 + $0xa78] sm:$0xff]  ;;  %v1765_v37 = vld [vmem:[#allocation12 + $0x160] sm:$0xff] }
 0x290   :  { %v2455_v57 = vpack.c.bf16 %v941_v49, %v937_v44  ;;  %v2457_v63 = vpack.c.bf16 %v950_v60, %v946_v53  ;;  %v965_v29 = vld [vmem:[#allocation9 + $0xaf0] sm:$0xff]  ;;  %v978_v44 = vld [vmem:[#allocation9 + $0xb58] sm:$0xff] }
 0x291   :  { %2564 = vmatpush1.bf16.msra.mxu0 %v2563_v1  ;;  %v1758_v1 = vld [vmem:[#allocation12 + $0x128] sm:$0xff]  ;;  %v1767_v4 = vld [vmem:[#allocation12 + $0x170] sm:$0xff] }
 0x292   :  { %2436 = vmatpush1.bf16.msra.mxu1 %v2435_v52  ;;  %2566 = vmatprep.subr.bf16.mxu0 %v2565_v5  ;;  %v1756_v52 = vld [vmem:[#allocation12 + $0x118] sm:$0xff]  ;;  %v973_v39 = vld [vmem:[#allocation9 + $0xb30] sm:$0xff]  ;;  %v2595_v45 = vpack.c.bf16 %v1767_v4, %v1765_v37 }
 0x293   :  { %2438 = vmatprep.subr.bf16.mxu1 %v2437_v3  ;;  %v945_v3 = vld [vmem:[#allocation9 + $0xa50] sm:$0xff]  ;;  %v2581_v58 = vpack.c.bf16 %v1756_v52, %v1754_v50  ;;  %v958_v5 = vld [vmem:[#allocation9 + $0xab8] sm:$0xff]  ;;  %v1769_v50 = vld [vmem:[#allocation12 + $0x180] sm:$0xff] }
 0x294   :  { %v2459_v7 = vpack.c.bf16 %v949_v0, %v945_v3  ;;  %v2461_v12 = vpack.c.bf16 %v958_v5, %v954_v54  ;;  %v1771_v52 = vld [vmem:[#allocation12 + $0x190] sm:$0xff] }
 0x295   :  { %2568 = vmatpush1.bf16.msra.mxu0 %v2567_v14  ;;  %v1762_v14 = vld [vmem:[#allocation12 + $0x148] sm:$0xff]  ;;  %v986_v3 = vld [vmem:[#allocation9 + $0xb98] sm:$0xff]  ;;  %v2599_v59 = vpack.c.bf16 %v1771_v52, %v1769_v50 }
 0x296   :  { %2440 = vmatpush1.bf16.msra.mxu1 %v2439_v2  ;;  %2570 = vmatprep.subr.bf16.mxu0 %v2569_v17  ;;  %v1760_v2 = vld [vmem:[#allocation12 + $0x138] sm:$0xff]  ;;  %v981_v60 = vld [vmem:[#allocation9 + $0xb70] sm:$0xff] }
 0x297   :  { %2442 = vmatprep.subr.bf16.mxu1 %v2441_v8  ;;  %v953_v8 = vld [vmem:[#allocation9 + $0xa90] sm:$0xff]  ;;  %v2585_v48 = vpack.c.bf16 %v1760_v2, %v1758_v1  ;;  %v966_v17 = vld [vmem:[#allocation9 + $0xaf8] sm:$0xff]  ;;  %v1773_v1 = vld [vmem:[#allocation12 + $0x1a0] sm:$0xff] }
 0x298   :  { %v2463_v19 = vpack.c.bf16 %v957_v13, %v953_v8  ;;  %v2465_v23 = vpack.c.bf16 %v966_v17, %v962_v16  ;;  %v1775_v2 = vld [vmem:[#allocation12 + $0x1b0] sm:$0xff] }
 0x299   :  { %2572 = vmatpush1.bf16.msra.mxu0 %v2571_v30  ;;  %v1766_v30 = vld [vmem:[#allocation12 + $0x168] sm:$0xff]  ;;  %v994_v8 = vld [vmem:[#allocation9 + $0xbd8] sm:$0xff]  ;;  %v2603_v10 = vpack.c.bf16 %v1775_v2, %v1773_v1 }
 0x29a   :  { %2444 = vmatpush1.bf16.msra.mxu1 %v2443_v15  ;;  %2574 = vmatprep.subr.bf16.mxu0 %v2573_v33  ;;  %v1764_v15 = vld [vmem:[#allocation12 + $0x158] sm:$0xff]  ;;  %v989_v5 = vld [vmem:[#allocation9 + $0xbb0] sm:$0xff] }
 0x29b   :  { %2446 = vmatprep.subr.bf16.mxu1 %v2445_v61  ;;  %v961_v61 = vld [vmem:[#allocation9 + $0xad0] sm:$0xff]  ;;  %v2589_v20 = vpack.c.bf16 %v1764_v15, %v1762_v14  ;;  %v974_v33 = vld [vmem:[#allocation9 + $0xb38] sm:$0xff] }
 0x29c   :  { %v2467_v34 = vpack.c.bf16 %v965_v29, %v961_v61  ;;  %v2469_v38 = vpack.c.bf16 %v974_v33, %v970_v32  ;;  %v993_v14 = vld [vmem:[#allocation9 + $0xbd0] sm:$0xff]  ;;  %v1002_v16 = vld [vmem:[#allocation9 + $0xc18] sm:$0xff] }
 0x29d   :  { %2576 = vmatpush1.bf16.msra.mxu0 %v2575_v41  ;;  %v1770_v41 = vld [vmem:[#allocation12 + $0x188] sm:$0xff]  ;;  %v1006_v17 = vld [vmem:[#allocation9 + $0xc38] sm:$0xff] }
 0x29e   :  { %2448 = vmatpush1.bf16.msra.mxu1 %v2447_v31  ;;  %2578 = vmatprep.subr.bf16.mxu0 %v2577_v40  ;;  %v1768_v31 = vld [vmem:[#allocation12 + $0x178] sm:$0xff]  ;;  %v997_v15 = vld [vmem:[#allocation9 + $0xbf0] sm:$0xff] }
 0x29f   :  { %2450 = vmatprep.subr.bf16.mxu1 %v2449_v35  ;;  %v969_v35 = vld [vmem:[#allocation9 + $0xb10] sm:$0xff]  ;;  %v2593_v36 = vpack.c.bf16 %v1768_v31, %v1766_v30  ;;  %v982_v40 = vld [vmem:[#allocation9 + $0xb78] sm:$0xff] }
 0x2a0   :  { %v2471_v46 = vpack.c.bf16 %v973_v39, %v969_v35  ;;  %v2473_v53 = vpack.c.bf16 %v982_v40, %v978_v44  ;;  %v1001_v61 = vld [vmem:[#allocation9 + $0xc10] sm:$0xff]  ;;  %v1014_v22 = vld [vmem:[#allocation9 + $0xc78] sm:$0xff] }
 0x2a1   :  { %2580 = vmatpush1.bf16.msra.mxu0 %v2579_v56  ;;  %v1774_v56 = vld [vmem:[#allocation12 + $0x1a8] sm:$0xff]  ;;  %v2489_v29 = vpack.c.bf16 %v1014_v22, %v1010_v21  ;;  %v1018_v32 = vld [vmem:[#allocation9 + $0xc98] sm:$0xff] }
 0x2a2   :  { %2452 = vmatpush1.bf16.msra.mxu1 %v2451_v42  ;;  %2582 = vmatprep.subr.bf16.mxu0 %v2581_v58  ;;  %v1772_v42 = vld [vmem:[#allocation12 + $0x198] sm:$0xff]  ;;  %v1009_v30 = vld [vmem:[#allocation9 + $0xc50] sm:$0xff] }
 0x2a3   :  { %2454 = vmatprep.subr.bf16.mxu1 %v2453_v47  ;;  %v977_v47 = vld [vmem:[#allocation9 + $0xb50] sm:$0xff]  ;;  %v2597_v49 = vpack.c.bf16 %v1772_v42, %v1770_v41  ;;  %v990_v58 = vld [vmem:[#allocation9 + $0xbb8] sm:$0xff] }
 0x2a4   :  { %v2475_v62 = vpack.c.bf16 %v981_v60, %v977_v47  ;;  %v2477_v54 = vpack.c.bf16 %v990_v58, %v986_v3  ;;  %v1013_v31 = vld [vmem:[#allocation9 + $0xc70] sm:$0xff]  ;;  %v1022_v33 = vld [vmem:[#allocation9 + $0xcb8] sm:$0xff]  ;;  %v1777_v3 = vld [vmem:[#allocation12 + $0x1c0] sm:$0xff] }
 0x2a5   :  { %2584 = vmatpush1.bf16.msra.mxu0 %v2583_v6  ;;  %v1778_v6 = vld [vmem:[#allocation12 + $0x1c8] sm:$0xff]  ;;  %v1026_v37 = vld [vmem:[#allocation9 + $0xcd8] sm:$0xff] }
 0x2a6   :  { %2456 = vmatpush1.bf16.msra.mxu1 %v2455_v57  ;;  %2586 = vmatprep.subr.bf16.mxu0 %v2585_v48  ;;  %v1776_v57 = vld [vmem:[#allocation12 + $0x1b8] sm:$0xff]  ;;  %v1017_v35 = vld [vmem:[#allocation9 + $0xc90] sm:$0xff] }
 0x2a7   :  { %2458 = vmatprep.subr.bf16.mxu1 %v2457_v63  ;;  %v985_v63 = vld [vmem:[#allocation9 + $0xb90] sm:$0xff]  ;;  %v2601_v0 = vpack.c.bf16 %v1776_v57, %v1774_v56  ;;  %v998_v48 = vld [vmem:[#allocation9 + $0xbf8] sm:$0xff] }
 0x2a8   :  { %v2479_v11 = vpack.c.bf16 %v989_v5, %v985_v63  ;;  %v2481_v13 = vpack.c.bf16 %v998_v48, %v994_v8  ;;  %v1030_v4 = vld [vmem:[#allocation9 + $0xcf8] sm:$0xff]  ;;  %v1025_v41 = vld [vmem:[#allocation9 + $0xcd0] sm:$0xff] }
 0x2a9   :  { %2588 = vmatpush1.bf16.msra.mxu0 %v2587_v18  ;;  %v2483_v18 = vpack.c.bf16 %v997_v15, %v993_v14  ;;  %v2497_v39 = vpack.c.bf16 %v1030_v4, %v1026_v37  ;;  %v1029_v42 = vld [vmem:[#allocation9 + $0xcf0] sm:$0xff]  ;;  %v1034_v44 = vld [vmem:[#allocation9 + $0xd18] sm:$0xff] }
 0x2aa   :  { %2460 = vmatpush1.bf16.msra.mxu1 %v2459_v7  ;;  %2590 = vmatprep.subr.bf16.mxu0 %v2589_v20  ;;  %v1780_v7 = vld [vmem:[#allocation12 + $0x1d8] sm:$0xff]  ;;  %v1005_v20 = vld [vmem:[#allocation9 + $0xc30] sm:$0xff] }
 0x2ab   :  { %2462 = vmatprep.subr.bf16.mxu1 %v2461_v12  ;;  %v2605_v12 = vpack.c.bf16 %v1780_v7, %v1778_v6  ;;  %v1038_v40 = vld [vmem:[#allocation9 + $0xd38] sm:$0xff]  ;;  %v1045_v60 = vld [vmem:[#allocation9 + $0xd70] sm:$0xff] }
 0x2ac   :  { %v1042_v47 = vld [vmem:[#allocation9 + $0xd58] sm:$0xff]  ;;  %v1049_v1 = vld [vmem:[#allocation9 + $0xd90] sm:$0xff] }
 0x2ad   :  { %2592 = vmatpush1.bf16.msra.mxu0 %v2591_v55  ;;  %v2491_v55 = vpack.c.bf16 %v1013_v31, %v1009_v30  ;;  %v1050_v56 = vld [vmem:[#allocation9 + $0xd98] sm:$0xff]  ;;  %v1053_v2 = vld [vmem:[#allocation9 + $0xdb0] sm:$0xff] }
 0x2ae   :  { %2464 = vmatpush1.bf16.msra.mxu1 %v2463_v19  ;;  %2594 = vmatprep.subr.bf16.mxu0 %v2593_v36  ;;  %v2485_v19 = vpack.c.bf16 %v1006_v17, %v1002_v16  ;;  %v1021_v36 = vld [vmem:[#allocation9 + $0xcb0] sm:$0xff]  ;;  %v1054_v57 = vld [vmem:[#allocation9 + $0xdb8] sm:$0xff] }
 0x2af   :  { %2466 = vmatprep.subr.bf16.mxu1 %v2465_v23  ;;  %v2487_v23 = vpack.c.bf16 %v1005_v20, %v1001_v61  ;;  %v1779_v58 = vld [vmem:[#allocation12 + $0x1d0] sm:$0xff]  ;;  %v1782_v7 = vld [vmem:[#allocation12 + $0x1e8] sm:$0xff]  ;;  %v1784_v8 = vld [vmem:[#allocation12 + $0x1f8] sm:$0xff] }
 0x2b0   :  { %v1062_v6 = vld [vmem:[#allocation9 + $0xdf8] sm:$0xff]  ;;  %v2609_v48 = vpack.c.bf16 %v1784_v8, %v1782_v7  ;;  %v1057_v15 = vld [vmem:[#allocation9 + $0xdd0] sm:$0xff] }
 0x2b1   :  { %2596 = vmatpush1.bf16.msra.mxu0 %v2595_v45  ;;  %v2501_v45 = vpack.c.bf16 %v1038_v40, %v1034_v44  ;;  %v1061_v16 = vld [vmem:[#allocation9 + $0xdf0] sm:$0xff]  ;;  %v1066_v17 = vld [vmem:[#allocation9 + $0xe18] sm:$0xff] }
 0x2b2   :  { %2468 = vmatpush1.bf16.msra.mxu1 %v2467_v34  ;;  %2598 = vmatprep.subr.bf16.mxu0 %v2597_v49  ;;  %v2493_v34 = vpack.c.bf16 %v1022_v33, %v1018_v32  ;;  %v1046_v49 = vld [vmem:[#allocation9 + $0xd78] sm:$0xff]  ;;  %v1786_v61 = vld [vmem:[#allocation12 + $0x208] sm:$0xff] }
 0x2b3   :  { %2470 = vmatprep.subr.bf16.mxu1 %v2469_v38  ;;  %v2495_v38 = vpack.c.bf16 %v1021_v36, %v1017_v35  ;;  %v2505_v52 = vpack.c.bf16 %v1046_v49, %v1042_v47  ;;  %v1788_v20 = vld [vmem:[#allocation12 + $0x218] sm:$0xff]  ;;  %v1065_v22 = vld [vmem:[#allocation9 + $0xe10] sm:$0xff] }
 0x2b4   :  { %v1074_v30 = vld [vmem:[#allocation9 + $0xe58] sm:$0xff] }
 0x2b5   :  { %2600 = vmatpush1.bf16.msra.mxu0 %v2599_v59  ;;  %v1078_v31 = vld [vmem:[#allocation9 + $0xe78] sm:$0xff] }
 0x2b6   :  { %2472 = vmatpush1.bf16.msra.mxu1 %v2471_v46  ;;  %2602 = vmatprep.subr.bf16.mxu0 %v2601_v0  ;;  %v1037_v46 = vld [vmem:[#allocation9 + $0xd30] sm:$0xff]  ;;  %v2509_v0 = vpack.c.bf16 %v1054_v57, %v1050_v56  ;;  %v2521_v33 = vpack.c.bf16 %v1078_v31, %v1074_v30  ;;  %v1082_v35 = vld [vmem:[#allocation9 + $0xe98] sm:$0xff] }
 0x2b7   :  { %2474 = vmatprep.subr.bf16.mxu1 %v2473_v53  ;;  %v1041_v53 = vld [vmem:[#allocation9 + $0xd50] sm:$0xff]  ;;  %v1086_v36 = vld [vmem:[#allocation9 + $0xeb8] sm:$0xff] }
 0x2b8   :  { %v2507_v59 = vpack.c.bf16 %v1045_v60, %v1041_v53  ;;  %v2525_v4 = vpack.c.bf16 %v1086_v36, %v1082_v35  ;;  %v1106_v53 = vld [vmem:[#allocation9 + $0xf58] sm:$0xff]  ;;  %v1793_v36 = vld [vmem:[#allocation12 + $0x240] sm:$0xff] }
 0x2b9   :  { %2604 = vmatpush1.bf16.msra.mxu0 %v2603_v10  ;;  %v1781_v10 = vld [vmem:[#allocation12 + $0x1e0] sm:$0xff]  ;;  %v1110_v60 = vld [vmem:[#allocation9 + $0xf78] sm:$0xff] }
 0x2ba   :  { %2476 = vmatpush1.bf16.msra.mxu1 %v2475_v62  ;;  %2606 = vmatprep.subr.bf16.mxu0 %v2605_v12  ;;  %v2607_v62 = vpack.c.bf16 %v1779_v58, %v1777_v3  ;;  %v2511_v12 = vpack.c.bf16 %v1053_v2, %v1049_v1  ;;  %v2537_v57 = vpack.c.bf16 %v1110_v60, %v1106_v53  ;;  %v1105_v3 = vld [vmem:[#allocation9 + $0xf50] sm:$0xff]  ;;  %v1126_v7 = vld [vmem:[#allocation9 + $0xff8] sm:$0xff]  ;;  %v1805_v60 = vld [vmem:[#allocation12 + $0x2a0] sm:$0xff] }
 0x2bb   :  { %2478 = vmatprep.subr.bf16.mxu1 %v2477_v54  ;;  %v1058_v54 = vld [vmem:[#allocation9 + $0xdd8] sm:$0xff]  ;;  %v1109_v58 = vld [vmem:[#allocation9 + $0xf70] sm:$0xff] }
 0x2bc   :  { %v2513_v14 = vpack.c.bf16 %v1062_v6, %v1058_v54  ;;  %v1113_v2 = vld [vmem:[#allocation9 + $0xf90] sm:$0xff]  ;;  %v1122_v6 = vld [vmem:[#allocation9 + $0xfd8] sm:$0xff] }
 0x2bd   :  { %2608 = vmatpush1.bf16.msra.mxu0 %v2607_v62  ;;  %v1118_v62 = vld [vmem:[#allocation9 + $0xfb8] sm:$0xff]  ;;  %v1117_v54 = vld [vmem:[#allocation9 + $0xfb0] sm:$0xff] }
 0x2be   :  { %2480 = vmatpush1.bf16.msra.mxu1 %v2479_v11  ;;  %v1783_v11 = vld [vmem:[#allocation12 + $0x1f0] sm:$0xff]  ;;  %2610 = vmatprep.subr.bf16.mxu0 %v2609_v48  ;;  %v2543_v8 = vpack.c.bf16 %v1117_v54, %v1113_v2  ;;  %v2545_v48 = vpack.c.bf16 %v1126_v7, %v1122_v6  ;;  %v1796_v35 = vld [vmem:[#allocation12 + $0x258] sm:$0xff]  ;;  %v1813_v7 = vld [vmem:[#allocation12 + $0x2e0] sm:$0xff] }
 0x2bf   :  { %2482 = vmatprep.subr.bf16.mxu1 %v2481_v13  ;;  %v2611_v13 = vpack.c.bf16 %v1783_v11, %v1781_v10  ;;  %v1121_v10 = vld [vmem:[#allocation9 + $0xfd0] sm:$0xff]  ;;  %v1816_v2 = vld [vmem:[#allocation12 + $0x2f8] sm:$0xff] }
 0x2c0   :  { %v1125_v11 = vld [vmem:[#allocation9 + $0xff0] sm:$0xff] }
 0x2c1   :  { %2612 = vmatpush1.bf16.msra.mxu0 %v2611_v13  ;;  %v3168_v13 = vld [vmem:[#allocation11] sm:$0xf] }
 0x2c2   :  { %2484 = vmatpush1.bf16.msra.mxu1 %v2483_v18  ;;  %v1070_v18 = vld [vmem:[#allocation9 + $0xe38] sm:$0xff] }
 0x2c3   :  { %2486 = vmatprep.subr.bf16.mxu1 %v2485_v19  ;;  %v2515_v19 = vpack.c.bf16 %v1061_v16, %v1057_v15  ;;  %v2517_v21 = vpack.c.bf16 %v1070_v18, %v1066_v17  ;;  %v1136_v15 = vrot.slane %v3168_v13, %v3101_v24 }
 0x2c5   :  { %1640 = vmatmul.mubr.f32.vlgmr.msra.gmra.mrb[6].mxu1 %v3145_v43  ;;  %v2499_v43 = vpack.c.bf16 %v1029_v42, %v1025_v41  ;;  %v1090_v41 = vld [vmem:[#allocation9 + $0xed8] sm:$0xff] }
 0x2c6   :  { %2488 = vmatpush1.bf16.msra.mxu1 %v2487_v23  ;;  %1710 = vmatprep.mubr.f32.mxu1 %v3148_v26  ;;  %v1033_v26 = vld [vmem:[#allocation9 + $0xd10] sm:$0xff]  ;;  %v1094_v42 = vld [vmem:[#allocation9 + $0xef8] sm:$0xff] }
 0x2c7   :  { %2490 = vmatprep.subr.bf16.mxu1 %v2489_v29  ;;  %v2503_v50 = vpack.c.bf16 %v1037_v46, %v1033_v26  ;;  %v1069_v23 = vld [vmem:[#allocation9 + $0xe30] sm:$0xff]  ;;  %v2613_v29 = vpack.c.bf16 %v1788_v20, %v1786_v61  ;;  %v2529_v40 = vpack.c.bf16 %v1094_v42, %v1090_v41  ;;  %v1098_v26 = vld [vmem:[#allocation9 + $0xf18] sm:$0xff]  ;;  %v1785_v20 = vld [vmem:[#allocation12 + $0x200] sm:$0xff] }
 0x2c8   :  { %v2519_v32 = vpack.c.bf16 %v1069_v23, %v1065_v22  ;;  %v1102_v46 = vld [vmem:[#allocation9 + $0xf38] sm:$0xff]  ;;  %v1790_v23 = vld [vmem:[#allocation12 + $0x228] sm:$0xff]  ;;  %v1797_v42 = vld [vmem:[#allocation12 + $0x260] sm:$0xff] }
 0x2c9   :  { %2614 = vmatprep.subr.bf16.mxu0 %v2613_v29  ;;  %v2533_v49 = vpack.c.bf16 %v1102_v46, %v1098_v26  ;;  %v1801_v46 = vld [vmem:[#allocation12 + $0x280] sm:$0xff] }
 0x2ca   :  { %2492 = vmatpush1.bf16.msra.mxu1 %v2491_v55  ;;  %v1073_v55 = vld [vmem:[#allocation9 + $0xe50] sm:$0xff] }
 0x2cb   :  { %2494 = vmatprep.subr.bf16.mxu1 %v2493_v34  ;;  %v1077_v34 = vld [vmem:[#allocation9 + $0xe70] sm:$0xff] }
 0x2cc   :  { %v2523_v37 = vpack.c.bf16 %v1077_v34, %v1073_v55  ;;  %v1791_v55 = vld [vmem:[#allocation12 + $0x230] sm:$0xff]  ;;  %v1794_v34 = vld [vmem:[#allocation12 + $0x248] sm:$0xff] }
 0x2ce   :  { %2496 = vmatpush1.bf16.msra.mxu1 %v2495_v38  ;;  %v1081_v38 = vld [vmem:[#allocation9 + $0xe90] sm:$0xff] }
 0x2cf   :  { %2498 = vmatprep.subr.bf16.mxu1 %v2497_v39  ;;  %v1085_v39 = vld [vmem:[#allocation9 + $0xeb0] sm:$0xff] }
 0x2d0   :  { %v2527_v44 = vpack.c.bf16 %v1085_v39, %v1081_v38  ;;  %v1800_v38 = vld [vmem:[#allocation12 + $0x278] sm:$0xff] }
 0x2d2   :  { %2500 = vmatpush1.bf16.msra.mxu1 %v2499_v43  ;;  %v1089_v43 = vld [vmem:[#allocation9 + $0xed0] sm:$0xff] }
 0x2d3   :  { %2502 = vmatprep.subr.bf16.mxu1 %v2501_v45  ;;  %v1093_v45 = vld [vmem:[#allocation9 + $0xef0] sm:$0xff] }
 0x2d4   :  { %v2531_v47 = vpack.c.bf16 %v1093_v45, %v1089_v43  ;;  %v1804_v43 = vld [vmem:[#allocation12 + $0x298] sm:$0xff] }
 0x2d6   :  { %2504 = vmatpush1.bf16.msra.mxu1 %v2503_v50  ;;  %v1097_v50 = vld [vmem:[#allocation9 + $0xf10] sm:$0xff] }
 0x2d7   :  { %v3163_v63 = vpop.f32.mrb[4].mxu1  ;;  %2506 = vmatprep.subr.bf16.mxu1 %v2505_v52  ;;  %v1101_v52 = vld [vmem:[#allocation9 + $0xf30] sm:$0xff] }
 0x2d8   :  { %v3165_v5 = vpop.f32.mrb[5].mxu1  ;;  %v2535_v56 = vpack.c.bf16 %v1101_v52, %v1097_v50  ;;  %v1808_v50 = vld [vmem:[#allocation12 + $0x2b8] sm:$0xff] }
 0x2d9   :  { %v1218_v17 = vadd.f32 %v3165_v5, %v1136_v15  ;;  %v2621_v5 = vpack.c.bf16 %v1796_v35, %v1794_v34  ;;  %v1819_v15 = vld [vmem:[#allocation12 + $0x310] sm:$0xff]  ;;  %v1829_v34 = vld [vmem:[#allocation12 + $0x360] sm:$0xff] }
 0x2da   :  { %2508 = vmatpush1.bf16.msra.mxu1 %v2507_v59  ;;  %v1114_v59 = vld [vmem:[#allocation9 + $0xf98] sm:$0xff] }
 0x2db   :  { %2510 = vmatprep.subr.bf16.mxu1 %v2509_v0  ;;  %v2539_v0 = vpack.c.bf16 %v1109_v58, %v1105_v3  ;;  %v2541_v1 = vpack.c.bf16 %v1118_v62, %v1114_v59  ;;  %v1812_v3 = vld [vmem:[#allocation12 + $0x2d8] sm:$0xff]  ;;  %v1809_v62 = vld [vmem:[#allocation12 + $0x2c0] sm:$0xff]  ;;  %v1831_v35 = vld [vmem:[#allocation12 + $0x370] sm:$0xff] }
 0x2de   :  { %2512 = vmatpush1.bf16.msra.mxu1 %v2511_v12  ;;  %v2547_v12 = vpack.c.bf16 %v1125_v11, %v1121_v10  ;;  %v1820_v10 = vld [vmem:[#allocation12 + $0x318] sm:$0xff] }
 0x2df   :  { %2514 = vmatprep.subr.bf16.mxu1 %v2513_v14  ;;  %v1132_v14 = vrot.slane %v3168_v13, %v3107_v27 }
 0x2e1   :  { %v1216_v16 = vadd.f32 %v3163_v63, %v1132_v14  ;;  %v1817_v14 = vld [vmem:[#allocation12 + $0x300] sm:$0xff] }
 0x2e2   :  { %2516 = vmatpush1.bf16.msra.mxu1 %v2515_v19 }
 0x2e3   :  { %2518 = vmatprep.subr.bf16.mxu1 %v2517_v21  ;;  %v1787_v21 = vld [vmem:[#allocation12 + $0x210] sm:$0xff] }
 0x2e4   :  { %v2615_v30 = vpack.c.bf16 %v1787_v21, %v1785_v20  ;;  %v1823_v20 = vld [vmem:[#allocation12 + $0x330] sm:$0xff]  ;;  %v1826_v21 = vld [vmem:[#allocation12 + $0x348] sm:$0xff] }
 0x2e6   :  { %2520 = vmatpush1.bf16.msra.mxu1 %v2519_v32 }
 0x2e7   :  { %2522 = vmatprep.subr.bf16.mxu1 %v2521_v33  ;;  %v1789_v33 = vld [vmem:[#allocation12 + $0x220] sm:$0xff] }
 0x2e8   :  { %v2619_v63 = vpack.c.bf16 %v1791_v55, %v1789_v33 }
 0x2ea   :  { %2524 = vmatpush1.bf16.msra.mxu1 %v2523_v37  ;;  %v1795_v37 = vld [vmem:[#allocation12 + $0x250] sm:$0xff] }
 0x2eb   :  { %2526 = vmatprep.subr.bf16.mxu1 %v2525_v4  ;;  %v1798_v4 = vld [vmem:[#allocation12 + $0x268] sm:$0xff]  ;;  %v2623_v39 = vpack.c.bf16 %v1795_v37, %v1793_v36  ;;  %v2659_v36 = vpack.c.bf16 %v1831_v35, %v1829_v34 }
 0x2ec   :  { %v2625_v41 = vpack.c.bf16 %v1800_v38, %v1798_v4  ;;  %v1833_v4 = vld [vmem:[#allocation12 + $0x380] sm:$0xff]  ;;  %v1835_v38 = vld [vmem:[#allocation12 + $0x390] sm:$0xff] }
 0x2ee   :  { %2528 = vmatpush1.bf16.msra.mxu1 %v2527_v44  ;;  %v1799_v44 = vld [vmem:[#allocation12 + $0x270] sm:$0xff] }
 0x2ef   :  { %2530 = vmatprep.subr.bf16.mxu1 %v2529_v40  ;;  %v1802_v40 = vld [vmem:[#allocation12 + $0x288] sm:$0xff]  ;;  %v2627_v45 = vpack.c.bf16 %v1799_v44, %v1797_v42  ;;  %v2663_v42 = vpack.c.bf16 %v1835_v38, %v1833_v4 }
 0x2f0   :  { %v2629_v26 = vpack.c.bf16 %v1804_v43, %v1802_v40  ;;  %v1837_v40 = vld [vmem:[#allocation12 + $0x3a0] sm:$0xff]  ;;  %v1839_v43 = vld [vmem:[#allocation12 + $0x3b0] sm:$0xff] }
 0x2f2   :  { %2532 = vmatpush1.bf16.msra.mxu1 %v2531_v47  ;;  %v1803_v47 = vld [vmem:[#allocation12 + $0x290] sm:$0xff] }
 0x2f3   :  { %2534 = vmatprep.subr.bf16.mxu1 %v2533_v49  ;;  %v1806_v49 = vld [vmem:[#allocation12 + $0x2a8] sm:$0xff]  ;;  %v2631_v52 = vpack.c.bf16 %v1803_v47, %v1801_v46  ;;  %v2667_v46 = vpack.c.bf16 %v1839_v43, %v1837_v40 }
 0x2f4   :  { %v2633_v53 = vpack.c.bf16 %v1808_v50, %v1806_v49  ;;  %v1841_v49 = vld [vmem:[#allocation12 + $0x3c0] sm:$0xff]  ;;  %v1843_v50 = vld [vmem:[#allocation12 + $0x3d0] sm:$0xff] }
 0x2f6   :  { %2536 = vmatpush1.bf16.msra.mxu1 %v2535_v56  ;;  %v1807_v56 = vld [vmem:[#allocation12 + $0x2b0] sm:$0xff] }
 0x2f7   :  { %2538 = vmatprep.subr.bf16.mxu1 %v2537_v57  ;;  %v1810_v57 = vld [vmem:[#allocation12 + $0x2c8] sm:$0xff]  ;;  %v2635_v58 = vpack.c.bf16 %v1807_v56, %v1805_v60  ;;  %v2671_v60 = vpack.c.bf16 %v1843_v50, %v1841_v49 }
 0x2f8   :  { %v2637_v59 = vpack.c.bf16 %v1812_v3, %v1810_v57  ;;  %v1845_v57 = vld [vmem:[#allocation12 + $0x3e0] sm:$0xff]  ;;  %v1847_v3 = vld [vmem:[#allocation12 + $0x3f0] sm:$0xff] }
 0x2fa   :  { %2540 = vmatpush1.bf16.msra.mxu1 %v2539_v0  ;;  %v1811_v0 = vld [vmem:[#allocation12 + $0x2d0] sm:$0xff] }
 0x2fb   :  { %2542 = vmatprep.subr.bf16.mxu1 %v2541_v1  ;;  %v1814_v1 = vld [vmem:[#allocation12 + $0x2e8] sm:$0xff]  ;;  %v2639_v54 = vpack.c.bf16 %v1811_v0, %v1809_v62  ;;  %v1144_v62 = vrot.slane %v3168_v13, %v278_v25 }
 0x2fc   :  { %v2641_v6 = vpack.c.bf16 %v1816_v2, %v1814_v1 }
 0x2fe   :  { %2544 = vmatpush1.bf16.msra.mxu1 %v2543_v8  ;;  %v1815_v8 = vld [vmem:[#allocation12 + $0x2f0] sm:$0xff] }
 0x2ff   :  { %2546 = vmatprep.subr.bf16.mxu1 %v2545_v48  ;;  %v1818_v48 = vld [vmem:[#allocation12 + $0x308] sm:$0xff]  ;;  %v2643_v11 = vpack.c.bf16 %v1815_v8, %v1813_v7  ;;  %v1849_v8 = vld [vmem:[#allocation14] sm:$0x3] }
 0x302   :  { %2548 = vmatpush1.bf16.msra.mxu1 %v2547_v12  ;;  %v2645_v12 = vpack.c.bf16 %v1820_v10, %v1818_v48  ;;  %v1854_v48 = vrot.slane %v1849_v8, %v3107_v27  ;;  %v1858_v10 = vrot.slane %v1849_v8, %v3101_v24 }
 0x305   :  { %1711 = vmatmul.mubr.f32.vlgmr.msra.gmra.mrb[6].mxu1 %v3156_v9  ;;  %v1792_v9 = vld [vmem:[#allocation12 + $0x238] sm:$0xff] }
 0x306   :  { %v2617_v32 = vpack.c.bf16 %v1792_v9, %v1790_v23 }
 0x357   :  { %v1428_v18 = vpop.f32.mrb[4].mxu0 }
 0x358   :  { %v2678_v19 = vadd.f32 %v1428_v18, %v1216_v16  ;;  %v1430_v61 = vpop.f32.mrb[5].mxu0  ;;  %v1822_v16 = vld [vmem:[#allocation12 + $0x328] sm:$0xff]  ;;  %v2647_v18 = vpack.c.bf16 %v1819_v15, %v1817_v14 }
 0x359   :  { %v2680_v22 = vadd.f32 %v1430_v61, %v1218_v17  ;;  %v1824_v17 = vld [vmem:[#allocation12 + $0x338] sm:$0xff]  ;;  %v1821_v61 = vld [vmem:[#allocation12 + $0x320] sm:$0xff] }
 0x35a   :  { %v1717_v31 = vmax.f32 %v2678_v19, 0.0  ;;  %v2649_v19 = vpack.c.bf16 %v1824_v17, %v1822_v16  ;;  %v2651_v23 = vpack.c.bf16 %v1823_v20, %v1821_v61 }
 0x35b   :  { %v1718_v29 = vmax.f32 %v2680_v22, 0.0  ;;  %v1828_v22 = vld [vmem:[#allocation12 + $0x358] sm:$0xff] }
 0x35c   :  { %v2653_v9 = vpack.c.bf16 %v1828_v22, %v1826_v21 }
 0x35d   :  { %1925 = vmatprep.mubr.f32.mxu0 %v1718_v29  ;;  %v1825_v29 = vld [vmem:[#allocation12 + $0x340] sm:$0xff] }
 0x35e   :  { %1926 = vmatmul.mubr.f32.vlgmr.msra.gmra.mrb[6].mxu0 %v1717_v31  ;;  %v1830_v31 = vld [vmem:[#allocation12 + $0x368] sm:$0xff] }
 0x35f   :  { %2616 = vmatpush1.bf16.msra.mxu0 %v2615_v30  ;;  %v1827_v30 = vld [vmem:[#allocation12 + $0x350] sm:$0xff] }
 0x360   :  { %2618 = vmatprep.subr.bf16.mxu0 %v2617_v32  ;;  %v1832_v32 = vld [vmem:[#allocation12 + $0x378] sm:$0xff]  ;;  %v2655_v33 = vpack.c.bf16 %v1827_v30, %v1825_v29 }
 0x361   :  { %v2657_v55 = vpack.c.bf16 %v1832_v32, %v1830_v31 }
 0x363   :  { %2620 = vmatpush1.bf16.msra.mxu0 %v2619_v63  ;;  %v1834_v63 = vld [vmem:[#allocation12 + $0x388] sm:$0xff] }
 0x364   :  { %2622 = vmatprep.subr.bf16.mxu0 %v2621_v5  ;;  %v1836_v5 = vld [vmem:[#allocation12 + $0x398] sm:$0xff] }
 0x365   :  { %v2661_v37 = vpack.c.bf16 %v1836_v5, %v1834_v63 }
 0x367   :  { %2624 = vmatpush1.bf16.msra.mxu0 %v2623_v39  ;;  %v1838_v39 = vld [vmem:[#allocation12 + $0x3a8] sm:$0xff] }
 0x368   :  { %2626 = vmatprep.subr.bf16.mxu0 %v2625_v41  ;;  %v1840_v41 = vld [vmem:[#allocation12 + $0x3b8] sm:$0xff] }
 0x369   :  { %v2665_v44 = vpack.c.bf16 %v1840_v41, %v1838_v39 }
 0x36b   :  { %2628 = vmatpush1.bf16.msra.mxu0 %v2627_v45  ;;  %v1842_v45 = vld [vmem:[#allocation12 + $0x3c8] sm:$0xff] }
 0x36c   :  { %2630 = vmatprep.subr.bf16.mxu0 %v2629_v26  ;;  %v1844_v26 = vld [vmem:[#allocation12 + $0x3d8] sm:$0xff] }
 0x36d   :  { %v2669_v47 = vpack.c.bf16 %v1844_v26, %v1842_v45 }
 0x36f   :  { %2632 = vmatpush1.bf16.msra.mxu0 %v2631_v52  ;;  %v1846_v52 = vld [vmem:[#allocation12 + $0x3e8] sm:$0xff] }
 0x370   :  { %2634 = vmatprep.subr.bf16.mxu0 %v2633_v53  ;;  %v1848_v53 = vld [vmem:[#allocation12 + $0x3f8] sm:$0xff] }
 0x371   :  { %v2673_v56 = vpack.c.bf16 %v1848_v53, %v1846_v52 }
 0x373   :  { %2636 = vmatpush1.bf16.msra.mxu0 %v2635_v58  ;;  %v2675_v58 = vpack.c.bf16 %v1847_v3, %v1845_v57 }
 0x374   :  { %2638 = vmatprep.subr.bf16.mxu0 %v2637_v59  ;;  %v1140_v59 = vrot.slane %v3168_v13, %v274_v28 }
 0x377   :  { %2640 = vmatpush1.bf16.msra.mxu0 %v2639_v54 }
 0x378   :  { %2642 = vmatprep.subr.bf16.mxu0 %v2641_v6 }
 0x37b   :  { %2644 = vmatpush1.bf16.msra.mxu0 %v2643_v11 }
 0x37c   :  { %2646 = vmatprep.subr.bf16.mxu0 %v2645_v12 }
 0x37f   :  { %2648 = vmatpush1.bf16.msra.mxu0 %v2647_v18 }
 0x380   :  { %2650 = vmatprep.subr.bf16.mxu0 %v2649_v19 }
 0x383   :  { %2652 = vmatpush1.bf16.msra.mxu0 %v2651_v23 }
 0x384   :  { %2654 = vmatprep.subr.bf16.mxu0 %v2653_v9 }
 0x387   :  { %2656 = vmatpush1.bf16.msra.mxu0 %v2655_v33 }
 0x388   :  { %2658 = vmatprep.subr.bf16.mxu0 %v2657_v55 }
 0x38b   :  { %2660 = vmatpush1.bf16.msra.mxu0 %v2659_v36 }
 0x38c   :  { %2662 = vmatprep.subr.bf16.mxu0 %v2661_v37 }
 0x38f   :  { %2664 = vmatpush1.bf16.msra.mxu0 %v2663_v42 }
 0x390   :  { %2666 = vmatprep.subr.bf16.mxu0 %v2665_v44 }
 0x393   :  { %2668 = vmatpush1.bf16.msra.mxu0 %v2667_v46 }
 0x394   :  { %2670 = vmatprep.subr.bf16.mxu0 %v2669_v47 }
 0x397   :  { %2672 = vmatpush1.bf16.msra.mxu0 %v2671_v60 }
 0x398   :  { %2674 = vmatprep.subr.bf16.mxu0 %v2673_v56 }
 0x39b   :  { %2676 = vmatpush1.bf16.msra.mxu0 %v2675_v58 }
 0x3d8   :  { %v1712_v0 = vpop.f32.mrb[6].mxu1 }
 0x3d9   :  { %v2681_v1 = vadd.f32 %v1712_v0, %v1140_v59  ;;  %v1714_v2 = vpop.f32.mrb[7].mxu1 }
 0x3da   :  { %v2682_v54 = vadd.f32 %v1714_v2, %v1144_v62 }
 0x3db   :  { %v1719_v7 = vmax.f32 %v2681_v1, 0.0 }
 0x3dc   :  { %v1720_v6 = vmax.f32 %v2682_v54, 0.0 }
 0x3de   :  { %1996 = vmatprep.mubr.f32.mxu0 %v1720_v6 }
 0x3df   :  { %1997 = vmatmul.mubr.f32.vlgmr.msra.gmra.mrb[6].mxu0 %v1719_v7 }
 0x4b2   :  { %v1998_v11 = vpop.f32.mrb[6].mxu0 }
 0x4b3   :  { %v2683_v12 = vadd.f32 %v1998_v11, %v1854_v48  ;;  %v2000_v28 = vpop.f32.mrb[7].mxu0 }
 0x4b4   :  { %v2684_v51 = vadd.f32 %v2000_v28, %v1858_v10 }
 0x4b5   :  { %v2003_v25 = vmax.f32 %v2683_v12, 0.0 }
 0x4b6   :  { %v2004_v13 = vmax.f32 %v2684_v51, 0.0 }
 0x4b7   :  { %2005 = vst [vmem:[#allocation15] sm:$0xff] %v2003_v25 }
 0x4b8   :  { %2006 = vst [vmem:[#allocation15 + $0x8] sm:$0xff] %v2004_v13 }
 0x4b9   :  { %2890 = shalt.err (!%p2887_p4)
}
 0x4ba   :  { %s2891_s0 = scalar_lea.hbm %s3203_s7, 256 }
 0x4bb   :  { %p2892_p5 = scmp.ne.s32.totalorder %s3203_s7, %s2891_s0  ;;  %p2895_p6 = scmp.lt.u32.totalorder %s2891_s0, %s3203_s7 }
 0x4bd   :  { %p2897_p7 = pnand %p2895_p6, %p2892_p5 }
 0x4bf   :  { %2900 = shalt.err (!%p2897_p7)
}
 0x4c0   :  { %2016 = dma.vmem_to_hbm [thread:$0]  %s2014_s13, 256, %s3203_s7, [#allocation5]  }
 0x4c1   :  { %2909 = dma.done.wait [#allocation5], 256  }
 0x4c2   :  { %2910 = vsyncadd [#allocation5], 4294967040 }
 0x4c3   :  { %2020 = vsyncpa [#allocation4], 1 }
 0x4c4   :  { %2021 = vsyncpa [#allocation7], 1 }
 0x4c5   :  { %2022 = vsyncpa [#allocation10], 1 }
 0x4c6   :  { %2023 = vsyncpa [#allocation13], 1 }
 0x4c7   :  { %2024 = vsyncpa [#allocation5], 1 }

</bundles_post_ra>
